<compile_context>
chip_gen: v7x
topology: tpu7x:2x2x1
jax: 0.10.0
libtpu: 0.0.40
codegen_flags: <defaults>
</compile_context>

<pallas_src>
import functools
import math

import jax
import jax.numpy as jnp
from jax.experimental import pallas as pl
from jax.experimental.pallas import tpu as pltpu


# ------------------------- per-generation tiling configuration -----------------

def _select_tile_config():
    """Pick tile sizes / VMEM budget from physical VMEM capacity."""
    vmem = None
    try:
        info = pltpu.get_tpu_info()
        vmem = getattr(info, "vmem_capacity_bytes", None)
    except Exception:
        vmem = None
    if vmem is not None and vmem >= 100 * 1024 * 1024:
        # v5e / v6e: 128 MiB physical VMEM -> big token tiles, big budget.
        return dict(tm=512, tn=512, tk=1024, ti=512, tq=256, tkv=512,
                    vmem_limit=96 * 1024 * 1024)
    # v7x (64 MiB physical VMEM) or unknown: conservative footprint.
    return dict(tm=256, tn=512, tk=512, ti=512, tq=256, tkv=512,
                vmem_limit=48 * 1024 * 1024)


_CFG = _select_tile_config()


def _pick_tile(dim, target, align):
    """Largest tile <= target that divides `dim` and is a multiple of `align`.
    Falls back to the full dim (always accepted when a block dim equals the
    array dim)."""
    if dim <= target:
        return dim
    t = (target // align) * align
    while t >= align:
        if dim % t == 0:
            return t
        t -= align
    return dim


def _compiler_params(dim_sem):
    return pltpu.CompilerParams(
        dimension_semantics=dim_sem,
        vmem_limit_bytes=_CFG["vmem_limit"],
    )


# ------------------------- Pallas kernels -------------------------

def _rms_matmul_kernel(x_ref, g_ref, w_ref, o_ref, xn_ref, *, eps):
    """Fused RMSNorm(x) @ W with the norm hoisted to the first N-tile.

    x:(tm,K) g:(1,K) w:(K,tn) o:(tm,tn) xn:(tm,K) scratch (normalized x)."""
    @pl.when(pl.program_id(1) == 0)
    def _():
        x = x_ref[...].astype(jnp.float32)
        ms = jnp.mean(x * x, axis=-1, keepdims=True)
        xn_ref[...] = (x * jax.lax.rsqrt(ms + eps)).astype(xn_ref.dtype) * g_ref[...]

    o_ref[...] = jnp.dot(
        xn_ref[...], w_ref[...], preferred_element_type=jnp.float32
    ).astype(o_ref.dtype)


def rms_linear(x2d, gamma, wt, eps, out_dtype=None):
    """RMSNorm + linear.  x2d:(M,K); wt:(K,N) pre-transposed; gamma:(K,)."""
    M, K = x2d.shape
    N = wt.shape[1]
    out_dtype = out_dtype or x2d.dtype
    tm = _pick_tile(M, _CFG["tm"], 8)
    tn = _pick_tile(N, _CFG["tn"], 128)
    grid = (M // tm, N // tn)
    # n carries the normalized-x scratch -> it must stay sequential ("arbitrary").
    # TODO(synk): on v7x megacore, splitting N (not M) across cores would halve
    # per-core weight HBM traffic; requires a core-aware norm init.
    return pl.pallas_call(
        functools.partial(_rms_matmul_kernel, eps=eps),
        out_shape=jax.ShapeDtypeStruct((M, N), out_dtype),
        grid_spec=pltpu.PrefetchScalarGridSpec(
            num_scalar_prefetch=0,
            grid=grid,
            in_specs=[
                pl.BlockSpec((tm, K), lambda m, n: (m, 0)),
                pl.BlockSpec((1, K), lambda m, n: (0, 0)),
                pl.BlockSpec((K, tn), lambda m, n: (0, n)),
            ],
            out_specs=pl.BlockSpec((tm, tn), lambda m, n: (m, n)),
            scratch_shapes=[pltpu.VMEM((tm, K), x2d.dtype)],
        ),
        compiler_params=_compiler_params(("parallel", "arbitrary")),
    )(x2d, gamma.reshape(1, K), wt)


def _matmul_kernel(x_ref, w_ref, o_ref, acc_ref):
    """K-tiled matmul with f32 accumulator.  x:(tm,tk) w:(tk,tn)."""
    kk = pl.program_id(2)

    @pl.when(kk == 0)
    def _():
        acc_ref[...] = jnp.zeros_like(acc_ref)

    acc_ref[...] += jnp.dot(
        x_ref[...], w_ref[...], preferred_element_type=jnp.float32
    )

    @pl.when(kk == pl.num_programs(2) - 1)
    def _():
        o_ref[...] = acc_ref[...].astype(o_ref.dtype)


def linear(x2d, wt, out_dtype=None):
    """Plain linear.  x2d:(M,K); wt:(K,N) pre-transposed."""
    M, K = x2d.shape
    N = wt.shape[1]
    out_dtype = out_dtype or x2d.dtype
    tm = _pick_tile(M, _CFG["tm"], 8)
    tn = _pick_tile(N, _CFG["tn"], 128)
    tk = _pick_tile(K, _CFG["tk"], 128)
    grid = (M // tm, N // tn, K // tk)
    return pl.pallas_call(
        _matmul_kernel,
        out_shape=jax.ShapeDtypeStruct((M, N), out_dtype),
        grid_spec=pltpu.PrefetchScalarGridSpec(
            num_scalar_prefetch=0,
            grid=grid,
            in_specs=[
                pl.BlockSpec((tm, tk), lambda m, n, k: (m, k)),
                pl.BlockSpec((tk, tn), lambda m, n, k: (k, n)),
            ],
            out_specs=pl.BlockSpec((tm, tn), lambda m, n, k: (m, n)),
            scratch_shapes=[pltpu.VMEM((tm, tn), jnp.float32)],
        ),
        compiler_params=_compiler_params(("parallel", "parallel", "arbitrary")),
    )(x2d, wt)


def _ffn_kernel(x_ref, g_ref, w1_ref, w3_ref, w2_ref, o_ref, xn_ref, acc_ref,
                *, eps):
    """Fused RMSNorm + SwiGLU FFN, tiled over the intermediate dim I.

    The norm is computed once per token tile (at ii == 0) into xn_ref and
    reused across all I-tiles.  x:(tm,D) g:(1,D) w1/w3:(D,ti) w2:(ti,D)."""
    ii = pl.program_id(1)

    @pl.when(ii == 0)
    def _():
        x = x_ref[...].astype(jnp.float32)
        ms = jnp.mean(x * x, axis=-1, keepdims=True)
        xn_ref[...] = (x * jax.lax.rsqrt(ms + eps)).astype(xn_ref.dtype) * g_ref[...]
        acc_ref[...] = jnp.zeros_like(acc_ref)

    xn = xn_ref[...]
    h1 = jnp.dot(xn, w1_ref[...], preferred_element_type=jnp.float32)
    h3 = jnp.dot(xn, w3_ref[...], preferred_element_type=jnp.float32)
    # Exact, overflow-safe SiLU: h1 -> -inf gives exp(-h1)=inf, h1/inf = -0.
    h = (h1 / (1.0 + jnp.exp(-h1))) * h3

    acc_ref[...] += jnp.dot(
        h.astype(w2_ref.dtype), w2_ref[...], preferred_element_type=jnp.float32
    )

    @pl.when(ii == pl.num_programs(1) - 1)
    def _():
        o_ref[...] = acc_ref[...].astype(o_ref.dtype)


def ffn(x2d, gamma, w1t, w3t, w2t, eps):
    """SwiGLU FFN with fused ffn_norm.  Weights pre-transposed to (in,out)."""
    M, D = x2d.shape
    I = w1t.shape[1]
    tm = _pick_tile(M, _CFG["tm"], 8)
    ti = _pick_tile(I, _CFG["ti"], 128)
    grid = (M // tm, I // ti)
    return pl.pallas_call(
        functools.partial(_ffn_kernel, eps=eps),
        out_shape=jax.ShapeDtypeStruct((M, D), x2d.dtype),
        grid_spec=pltpu.PrefetchScalarGridSpec(
            num_scalar_prefetch=0,
            grid=grid,
            in_specs=[
                pl.BlockSpec((tm, D), lambda m, i: (m, 0)),
                pl.BlockSpec((1, D), lambda m, i: (0, 0)),
                pl.BlockSpec((D, ti), lambda m, i: (0, i)),
                pl.BlockSpec((D, ti), lambda m, i: (0, i)),
                pl.BlockSpec((ti, D), lambda m, i: (i, 0)),
            ],
            out_specs=pl.BlockSpec((tm, D), lambda m, i: (m, 0)),
            scratch_shapes=[
                pltpu.VMEM((tm, D), x2d.dtype),      # normalized x (reused)
                pltpu.VMEM((tm, D), jnp.float32),    # output accumulator
            ],
        ),
        compiler_params=_compiler_params(("parallel", "arbitrary")),
    )(x2d, gamma.reshape(1, D), w1t, w3t, w2t)


def _flash_attn_kernel(qi_tab, ki_tab, last_tab, q_ref, k_ref, v_ref, o_ref,
                       m_ref, l_ref, acc_ref, *, scale, tq, tk, rep):
    """Flash attention over a lower-triangular (qi, ki) pair table.

    One grid step handles the whole group of `rep` query heads that share one
    K/V head, so each K/V tile is fetched once per group.
    q:(1,rep,tq,hd) k/v:(1,1,tk,hd) o:(1,rep,tq,hd)."""
    p = pl.program_id(2)
    qi = qi_tab[p]
    ki = ki_tab[p]

    @pl.when(ki == 0)
    def _():
        m_ref[...] = jnp.full(m_ref.shape, -1e30, jnp.float32)
        l_ref[...] = jnp.zeros_like(l_ref)
        acc_ref[...] = jnp.zeros_like(acc_ref)

    hd = q_ref.shape[-1]
    q = q_ref[...].reshape(rep * tq, hd)
    k = k_ref[...].reshape(tk, hd)
    v = v_ref[...].reshape(tk, hd)

    def update(masked):
        s = jax.lax.dot_general(
            q, k, (((1,), (1,)), ((), ())),
            preferred_element_type=jnp.float32) * scale          # (rep*tq, tk)
        if masked:
            row = qi * tq + jax.lax.broadcasted_iota(
                jnp.int32, (rep, tq, tk), 1).reshape(rep * tq, tk)
            col = ki * tk + jax.lax.broadcasted_iota(
                jnp.int32, (rep * tq, tk), 1)
            s = jnp.where(row >= col, s, -1e30)
        m_prev = m_ref[...]
        m_new = jnp.maximum(m_prev, jnp.max(s, axis=-1, keepdims=True))
        alpha = jnp.exp(m_prev - m_new)
        pexp = jnp.exp(s - m_new)
        l_ref[...] = alpha * l_ref[...] + jnp.sum(pexp, axis=-1, keepdims=True)
        acc_ref[...] = alpha * acc_ref[...] + jax.lax.dot_general(
            pexp.astype(v.dtype), v, (((1,), (0,)), ((), ())),
            preferred_element_type=jnp.float32)
        m_ref[...] = m_new

    # Only tiles straddling the causal diagonal need the mask.
    on_diag = qi * tq < ki * tk + (tk - 1)

    @pl.when(on_diag)
    def _():
        update(True)

    @pl.when(jnp.logical_not(on_diag))
    def _():
        update(False)

    @pl.when(last_tab[p] == 1)
    def _():
        out = acc_ref[...] * pl.reciprocal(l_ref[...], approx=True)
        o_ref[...] = out.astype(o_ref.dtype).reshape(1, rep, tq, hd)


def flash_attention(q, k, v, *, scale, rep):
    """q:(B,H,S,hd)  k/v:(B,HL,S,hd), H = HL*rep (GQA)."""
    B, H, S, hd = q.shape
    HL = H // rep
    tq = _pick_tile(S, _CFG["tq"], 8)
    tk = _pick_tile(S, _CFG["tkv"], 8)
    nq, nk = S // tq, S // tk

    # Lower-triangular pair table: masked upper-triangular K/V tiles are
    # never DMA'd.  Prefill-only (positions start at 0).
    pairs = [(i, j) for i in range(nq) for j in range(nk)
             if j * tk <= i * tq + tq - 1]
    qi_tab = jnp.asarray([pr[0] for pr in pairs], dtype=jnp.int32)
    ki_tab = jnp.asarray([pr[1] for pr in pairs], dtype=jnp.int32)
    last_tab = jnp.asarray(
        [1 if (idx + 1 == len(pairs) or pairs[idx + 1][0] != pr[0]) else 0
         for idx, pr in enumerate(pairs)], dtype=jnp.int32)

    grid = (B, HL, len(pairs))
    kernel = functools.partial(_flash_attn_kernel, scale=scale, tq=tq, tk=tk,
                               rep=rep)
    return pl.pallas_call(
        kernel,
        out_shape=jax.ShapeDtypeStruct((B, H, S, hd), q.dtype),
        grid_spec=pltpu.PrefetchScalarGridSpec(
            num_scalar_prefetch=3,
            grid=grid,
            in_specs=[
                pl.BlockSpec((1, rep, tq, hd),
                             lambda b, g, p, qt, kt, lt: (b, g, qt[p], 0)),
                pl.BlockSpec((1, 1, tk, hd),
                             lambda b, g, p, qt, kt, lt: (b, g, kt[p], 0)),
                pl.BlockSpec((1, 1, tk, hd),
                             lambda b, g, p, qt, kt, lt: (b, g, kt[p], 0)),
            ],
            out_specs=pl.BlockSpec((1, rep, tq, hd),
                                   lambda b, g, p, qt, kt, lt: (b, g, qt[p], 0)),
            scratch_shapes=[
                pltpu.VMEM((rep * tq, 1), jnp.float32),    # running max
                pltpu.VMEM((rep * tq, 1), jnp.float32),    # running denom
                pltpu.VMEM((rep * tq, hd), jnp.float32),   # output accumulator
            ],
        ),
        compiler_params=_compiler_params(("parallel", "parallel", "arbitrary")),
    )(qi_tab, ki_tab, last_tab, q, k, v)


# ------------------------- JAX glue -------------------------

def find_multiple(n, k):
    return n if n % k == 0 else n + k - n % k


def precompute_freqs_cis(seq_len, n_elem, base=10000.0):
    freqs = 1.0 / (
        base ** (jnp.arange(0, n_elem, 2)[: n_elem // 2].astype(jnp.float32) / n_elem)
    )
    t = jnp.arange(seq_len, dtype=jnp.float32)
    freqs = jnp.outer(t, freqs)
    return jnp.stack([jnp.cos(freqs), jnp.sin(freqs)], axis=-1)   # f32 for accuracy


def apply_rotary_emb(x, freqs_cis):
    # x: (B, S, H, hd) ; freqs_cis: (S, hd//2, 2) f32
    xs = x.astype(jnp.float32).reshape(*x.shape[:-1], -1, 2)
    fc = freqs_cis.reshape(1, xs.shape[1], 1, xs.shape[3], 2)
    out = jnp.stack(
        [
            xs[..., 0] * fc[..., 0] - xs[..., 1] * fc[..., 1],
            xs[..., 1] * fc[..., 0] + xs[..., 0] * fc[..., 1],
        ],
        axis=-1,
    )
    return out.reshape(*x.shape).astype(x.dtype)


def init_params(key, cfg, dtype=jnp.bfloat16):
    D, H, HL, hd = cfg["dim"], cfg["n_head"], cfg["n_local_heads"], cfg["head_dim"]
    I, V = cfg["intermediate_size"], cfg["vocab_size"]
    total_head_dim = (H + 2 * HL) * hd

    def nrm(k, shape):
        return (0.02 * jax.random.normal(k, shape, dtype=jnp.float32)).astype(dtype)

    keys = jax.random.split(key, 2 + 5 * cfg["n_layer"])
    # nn.Linear stores weight as (out, in); transpose ONCE here to (in, out)
    # so no per-call transpose is needed.
    params = {
        "tok_embeddings": nrm(keys[0], (V, D)),
        "output_t": jnp.transpose(nrm(keys[1], (V, D))),
        "norm": jnp.ones((D,), dtype),
        "layers": [],
    }
    for l in range(cfg["n_layer"]):
        ks = keys[2 + 5 * l: 2 + 5 * (l + 1)]
        params["layers"].append(
            {
                "wqkv_t": jnp.transpose(nrm(ks[0], (total_head_dim, D))),
                "wo_t": jnp.transpose(nrm(ks[1], (D, D))),
                "w1_t": jnp.transpose(nrm(ks[2], (I, D))),
                "w3_t": jnp.transpose(nrm(ks[3], (I, D))),
                "w2_t": jnp.transpose(nrm(ks[4], (D, I))),
                "attention_norm": jnp.ones((D,), dtype),
                "ffn_norm": jnp.ones((D,), dtype),
            }
        )
    params["freqs_cis"] = precompute_freqs_cis(
        cfg["block_size"], cfg["head_dim"], cfg["rope_base"]
    )
    return params


def transformer_forward(params, idx, input_pos, *, cfg):
    B, S = idx.shape
    D, H, HL, hd = cfg["dim"], cfg["n_head"], cfg["n_local_heads"], cfg["head_dim"]
    eps = cfg["norm_eps"]
    kv_size = HL * hd
    rep = H // HL
    scale = 1.0 / math.sqrt(hd)

    freqs_cis = params["freqs_cis"][input_pos]        # (S, hd//2, 2)
    x = params["tok_embeddings"][idx]                 # (B, S, D) bf16

    for lp in params["layers"]:
        # --- attention block: fused attention_norm + qkv projection ---
        qkv = rms_linear(x.reshape(B * S, D), lp["attention_norm"],
                         lp["wqkv_t"], eps).reshape(B, S, -1)
        q, k, v = jnp.split(qkv, [D, D + kv_size], axis=-1)
        q = q.reshape(B, S, H, hd)
        k = k.reshape(B, S, HL, hd)
        v = v.reshape(B, S, HL, hd)
        q = apply_rotary_emb(q, freqs_cis)
        k = apply_rotary_emb(k, freqs_cis)
        q = q.transpose(0, 2, 1, 3)                   # (B, H, S, hd)
        k = k.transpose(0, 2, 1, 3)                   # (B, HL, S, hd)
        v = v.transpose(0, 2, 1, 3)
        # Prefill: attend over the S freshly-computed positions only (the
        # masked Smax cache slots of the reference contribute nothing).
        # TODO(synk): decode path needs a persistent KV cache written back via
        # input_output_aliases and absolute-position masking (input_pos offset).
        y = flash_attention(q, k, v, scale=scale, rep=rep)        # (B, H, S, hd)
        y = y.transpose(0, 2, 1, 3).reshape(B * S, D)
        y = linear(y, lp["wo_t"]).reshape(B, S, D)
        h = x + y
        # --- feed-forward block: fused ffn_norm + SwiGLU ---
        f = ffn(h.reshape(B * S, D), lp["ffn_norm"],
                lp["w1_t"], lp["w3_t"], lp["w2_t"], eps).reshape(B, S, D)
        x = h + f

    # final norm fused with the output head; logits in f32
    logits = rms_linear(x.reshape(B * S, D), params["norm"],
                        params["output_t"], eps, out_dtype=jnp.float32)
    return logits.reshape(B, S, cfg["vocab_size"])


if __name__ == "__main__":
    # Small config consistent with ModelArgs semantics.
    dim, n_head, n_local_heads, n_layer = 64, 4, 2, 2
    cfg = {
        "block_size": 32,
        "vocab_size": 96,
        "n_layer": n_layer,
        "n_head": n_head,
        "n_local_heads": n_local_heads,
        "dim": dim,
        "head_dim": dim // n_head,
        "intermediate_size": 128,
        "rope_base": 10000.0,
        "norm_eps": 1e-5,
    }
    B, S = 2, 8
    cfg["max_seq_length"] = find_multiple(S, 8)   # setup_caches equivalent

    key = jax.random.PRNGKey(0)
    pkey, ikey = jax.random.split(key)
    params = init_params(pkey, cfg)

    idx = jax.random.randint(ikey, (B, S), 0, cfg["vocab_size"], dtype=jnp.int32)
    input_pos = jnp.arange(S, dtype=jnp.int32)

    fwd = jax.jit(functools.partial(transformer_forward, cfg=cfg))
    logits = fwd(params, idx, input_pos)
    jax.block_until_ready(logits)
    assert logits.shape == (B, S, cfg["vocab_size"]), logits.shape
    print("KERNEL_OK")
</pallas_src>

<mosaic_0001>
module attributes {stable_mosaic.version = 11 : i64} {
  func.func @_rms_matmul_kernel(%arg0: i32, %arg1: i32, %arg2: memref<16x64xbf16, #tpu.memory_space<vmem>>, %arg3: memref<1x64xbf16, #tpu.memory_space<vmem>>, %arg4: memref<64x128xbf16, #tpu.memory_space<vmem>>, %arg5: memref<16x128xbf16, #tpu.memory_space<vmem>>, %arg6: memref<16x64xbf16, #tpu.memory_space<vmem>>) attributes {dimension_semantics = [#tpu.dimension_semantics<parallel>, #tpu.dimension_semantics<arbitrary>], iteration_bounds = array<i64: 1, 1>, scalar_prefetch = 0 : i64, scratch_operands = 1 : i64, tpu.core_type = #tpu.core_type<tc>, window_params = [{transform_indices = @transform_0, window_bounds = array<i64: 16, 64>}, {pipeline_mode = #tpu.pipeline_mode<synchronous>, transform_indices = @transform_1, window_bounds = array<i64: 1, 64>}, {transform_indices = @transform_2, window_bounds = array<i64: 64, 128>}, {transform_indices = @transform_3, window_bounds = array<i64: 16, 128>}]} {
    %c0_i32 = arith.constant 0 : i32
    %0 = arith.cmpi eq, %arg1, %c0_i32 : i32
    %1 = arith.extui %0 : i1 to i32
    %c0_i32_0 = arith.constant 0 : i32
    %2 = arith.cmpi ne, %1, %c0_i32_0 : i32
    scf.if %2 {
      %c0_6 = arith.constant 0 : index
      %c0_7 = arith.constant 0 : index
      %8 = vector.load %arg2[%c0_6, %c0_7] : memref<16x64xbf16, #tpu.memory_space<vmem>>, vector<16x64xbf16>
      %9 = arith.extf %8 : vector<16x64xbf16> to vector<16x64xf32>
      %10 = arith.mulf %9, %9 : vector<16x64xf32>
      %cst_8 = arith.constant dense<0.000000e+00> : vector<16xf32>
      %11 = vector.multi_reduction <add>, %10, %cst_8 [1] : vector<16x64xf32> to vector<16xf32>
      %12 = vector.shape_cast %11 : vector<16xf32> to vector<16x1xf32>
      %cst_9 = arith.constant 6.400000e+01 : f32
      %13 = vector.broadcast %cst_9 : f32 to vector<16x1xf32>
      %14 = arith.divf %12, %13 : vector<16x1xf32>
      %cst_10 = arith.constant 9.99999974E-6 : f32
      %15 = vector.broadcast %cst_10 : f32 to vector<16x1xf32>
      %16 = arith.addf %14, %15 : vector<16x1xf32>
      %17 = math.rsqrt %16 : vector<16x1xf32>
      %18 = vector.broadcast %17 : vector<16x1xf32> to vector<16x64xf32>
      %19 = arith.mulf %9, %18 : vector<16x64xf32>
      %20 = arith.truncf %19 : vector<16x64xf32> to vector<16x64xbf16>
      %c0_11 = arith.constant 0 : index
      %c0_12 = arith.constant 0 : index
      %21 = vector.load %arg3[%c0_11, %c0_12] : memref<1x64xbf16, #tpu.memory_space<vmem>>, vector<1x64xbf16>
      %22 = vector.broadcast %21 : vector<1x64xbf16> to vector<16x64xbf16>
      %23 = arith.mulf %20, %22 : vector<16x64xbf16>
      %c0_13 = arith.constant 0 : index
      %c0_14 = arith.constant 0 : index
      %24 = vector.load %arg6[%c0_13, %c0_14] : memref<16x64xbf16, #tpu.memory_space<vmem>>, vector<16x64xbf16>
      tpu.vector_store %arg6[%c0_13, %c0_14], %23 {strides = array<i32>} : memref<16x64xbf16, #tpu.memory_space<vmem>>, vector<16x64xbf16>,
    } else {
    }
    %c0 = arith.constant 0 : index
    %c0_1 = arith.constant 0 : index
    %3 = vector.load %arg6[%c0, %c0_1] : memref<16x64xbf16, #tpu.memory_space<vmem>>, vector<16x64xbf16>
    %c0_2 = arith.constant 0 : index
    %c0_3 = arith.constant 0 : index
    %4 = vector.load %arg4[%c0_2, %c0_3] : memref<64x128xbf16, #tpu.memory_space<vmem>>, vector<64x128xbf16>
    %cst = arith.constant dense<0.000000e+00> : vector<16x128xf32>
    %5 = tpu.matmul %3, %4, %cst {dimension_numbers = #tpu.dot_dimension_numbers<[1], [0], [0], [1], [0, 0, 1, 1], [], []>} : vector<16x64xbf16>, vector<64x128xbf16>, vector<16x128xf32> -> vector<16x128xf32>
    %6 = arith.truncf %5 : vector<16x128xf32> to vector<16x128xbf16>
    %c0_4 = arith.constant 0 : index
    %c0_5 = arith.constant 0 : index
    %7 = vector.load %arg5[%c0_4, %c0_5] : memref<16x128xbf16, #tpu.memory_space<vmem>>, vector<16x128xbf16>
    tpu.vector_store %arg5[%c0_4, %c0_5], %6 {strides = array<i32>} : memref<16x128xbf16, #tpu.memory_space<vmem>>, vector<16x128xbf16>,
    return
  }
  func.func @transform_0(%arg0: i32, %arg1: i32) -> (i32, i32) {
    %c0_i32 = arith.constant 0 : i32
    %c0_i32_0 = arith.constant 0 : i32
    return %arg0, %c0_i32 : i32, i32
  }
  func.func @transform_1(%arg0: i32, %arg1: i32) -> (i32, i32) {
    %c0_i32 = arith.constant 0 : i32
    %c0_i32_0 = arith.constant 0 : i32
    %c0_i32_1 = arith.constant 0 : i32
    return %c0_i32, %c0_i32_0 : i32, i32
  }
  func.func @transform_2(%arg0: i32, %arg1: i32) -> (i32, i32) {
    %c0_i32 = arith.constant 0 : i32
    %c0_i32_0 = arith.constant 0 : i32
    return %c0_i32, %arg1 : i32, i32
  }
  func.func @transform_3(%arg0: i32, %arg1: i32) -> (i32, i32) {
    %c0_i32 = arith.constant 0 : i32
    return %arg0, %arg1 : i32, i32
  }
}

module attributes {stable_mosaic.version = 11 : i64} {
  func.func @_flash_attn_kernel(%arg0: i32, %arg1: i32, %arg2: i32, %arg3: memref<1xi32, #tpu.memory_space<smem>>, %arg4: memref<1xi32, #tpu.memory_space<smem>>, %arg5: memref<1xi32, #tpu.memory_space<smem>>, %arg6: memref<1x2x8x16xbf16, #tpu.memory_space<vmem>>, %arg7: memref<1x1x8x16xbf16, #tpu.memory_space<vmem>>, %arg8: memref<1x1x8x16xbf16, #tpu.memory_space<vmem>>, %arg9: memref<1x2x8x16xbf16, #tpu.memory_space<vmem>>, %arg10: memref<16x1xf32, #tpu.memory_space<vmem>>, %arg11: memref<16x1xf32, #tpu.memory_space<vmem>>, %arg12: memref<16x16xf32, #tpu.memory_space<vmem>>) attributes {dimension_semantics = [#tpu.dimension_semantics<parallel>, #tpu.dimension_semantics<parallel>, #tpu.dimension_semantics<arbitrary>], iteration_bounds = array<i64: 2, 2, 1>, scalar_prefetch = 3 : i64, scratch_operands = 3 : i64, tpu.core_type = #tpu.core_type<tc>, window_params = [{transform_indices = @transform_0, window_bounds = array<i64: 1, 2, 8, 16>}, {transform_indices = @transform_1, window_bounds = array<i64: 1, 1, 8, 16>}, {transform_indices = @transform_2, window_bounds = array<i64: 1, 1, 8, 16>}, {transform_indices = @transform_3, window_bounds = array<i64: 1, 2, 8, 16>}]} {
    %0 = arith.index_cast %arg2 : i32 to index
    %1 = memref.load %arg3[%0] : memref<1xi32, #tpu.memory_space<smem>>
    %2 = arith.index_cast %arg2 : i32 to index
    %3 = memref.load %arg4[%2] : memref<1xi32, #tpu.memory_space<smem>>
    %c0_i32 = arith.constant 0 : i32
    %4 = arith.cmpi eq, %3, %c0_i32 : i32
    %5 = arith.extui %4 : i1 to i32
    %c0_i32_0 = arith.constant 0 : i32
    %6 = arith.cmpi ne, %5, %c0_i32_0 : i32
    scf.if %6 {
      %cst = arith.constant -1.000000e+30 : f32
      %27 = vector.broadcast %cst : f32 to vector<16x1xf32>
      %c0_16 = arith.constant 0 : index
      %c0_17 = arith.constant 0 : index
      %28 = vector.load %arg10[%c0_16, %c0_17] : memref<16x1xf32, #tpu.memory_space<vmem>>, vector<16x1xf32>
      tpu.vector_store %arg10[%c0_16, %c0_17], %27 {strides = array<i32>} : memref<16x1xf32, #tpu.memory_space<vmem>>, vector<16x1xf32>,
      %cst_18 = arith.constant 0.000000e+00 : f32
      %29 = vector.broadcast %cst_18 : f32 to vector<16x1xf32>
      %c0_19 = arith.constant 0 : index
      %c0_20 = arith.constant 0 : index
      %30 = vector.load %arg11[%c0_19, %c0_20] : memref<16x1xf32, #tpu.memory_space<vmem>>, vector<16x1xf32>
      tpu.vector_store %arg11[%c0_19, %c0_20], %29 {strides = array<i32>} : memref<16x1xf32, #tpu.memory_space<vmem>>, vector<16x1xf32>,
      %cst_21 = arith.constant 0.000000e+00 : f32
      %31 = vector.broadcast %cst_21 : f32 to vector<16x16xf32>
      %c0_22 = arith.constant 0 : index
      %c0_23 = arith.constant 0 : index
      %32 = vector.load %arg12[%c0_22, %c0_23] : memref<16x16xf32, #tpu.memory_space<vmem>>, vector<16x16xf32>
      tpu.vector_store %arg12[%c0_22, %c0_23], %31 {strides = array<i32>} : memref<16x16xf32, #tpu.memory_space<vmem>>, vector<16x16xf32>,
    } else {
    }
    %c0 = arith.constant 0 : index
    %c0_1 = arith.constant 0 : index
    %c0_2 = arith.constant 0 : index
    %c0_3 = arith.constant 0 : index
    %7 = vector.load %arg6[%c0, %c0_1, %c0_2, %c0_3] : memref<1x2x8x16xbf16, #tpu.memory_space<vmem>>, vector<1x2x8x16xbf16>
    %8 = vector.shape_cast %7 : vector<1x2x8x16xbf16> to vector<16x16xbf16>
    %c0_4 = arith.constant 0 : index
    %c0_5 = arith.constant 0 : index
    %c0_6 = arith.constant 0 : index
    %c0_7 = arith.constant 0 : index
    %9 = vector.load %arg7[%c0_4, %c0_5, %c0_6, %c0_7] : memref<1x1x8x16xbf16, #tpu.memory_space<vmem>>, vector<1x1x8x16xbf16>
    %10 = vector.shape_cast %9 : vector<1x1x8x16xbf16> to vector<8x16xbf16>
    %c0_8 = arith.constant 0 : index
    %c0_9 = arith.constant 0 : index
    %c0_10 = arith.constant 0 : index
    %c0_11 = arith.constant 0 : index
    %11 = vector.load %arg8[%c0_8, %c0_9, %c0_10, %c0_11] : memref<1x1x8x16xbf16, #tpu.memory_space<vmem>>, vector<1x1x8x16xbf16>
    %12 = vector.shape_cast %11 : vector<1x1x8x16xbf16> to vector<8x16xbf16>
    %c8_i32 = arith.constant 8 : i32
    %13 = arith.muli %1, %c8_i32 : i32
    %c8_i32_12 = arith.constant 8 : i32
    %14 = arith.muli %3, %c8_i32_12 : i32
    %c7_i32 = arith.constant 7 : i32
    %15 = arith.addi %14, %c7_i32 : i32
    %16 = arith.cmpi slt, %13, %15 : i32
    %17 = arith.extui %16 : i1 to i32
    %c0_i32_13 = arith.constant 0 : i32
    %18 = arith.cmpi ne, %17, %c0_i32_13 : i32
    scf.if %18 {
      %cst = arith.constant dense<0.000000e+00> : vector<16x8xf32>
      %27 = tpu.matmul %8, %10, %cst {dimension_numbers = #tpu.dot_dimension_numbers<[1], [1], [0], [0], [0, 0, 1, 0], [], []>} : vector<16x16xbf16>, vector<8x16xbf16>, vector<16x8xf32> -> vector<16x8xf32>
      %cst_16 = arith.constant 2.500000e-01 : f32
      %28 = vector.broadcast %cst_16 : f32 to vector<16x8xf32>
      %29 = arith.mulf %27, %28 : vector<16x8xf32>
      %c8_i32_17 = arith.constant 8 : i32
      %30 = arith.muli %1, %c8_i32_17 : i32
      %31 = tpu.iota {dimensions = array<i32: 1>} : vector<2x8x8xi32>
      %32 = vector.shape_cast %31 : vector<2x8x8xi32> to vector<16x8xi32>
      %33 = vector.broadcast %30 : i32 to vector<16x8xi32>
      %34 = arith.addi %33, %32 : vector<16x8xi32>
      %c8_i32_18 = arith.constant 8 : i32
      %35 = arith.muli %3, %c8_i32_18 : i32
      %36 = tpu.iota {dimensions = array<i32: 1>} : vector<16x8xi32>
      %37 = vector.broadcast %35 : i32 to vector<16x8xi32>
      %38 = arith.addi %37, %36 : vector<16x8xi32>
      %39 = arith.cmpi sge, %34, %38 : vector<16x8xi32>
      %cst_19 = arith.constant -1.000000e+30 : f32
      %40 = vector.broadcast %cst_19 : f32 to vector<16x8xf32>
      %41 = arith.select %39, %29, %40 : vector<16x8xi1>, vector<16x8xf32>
      %c0_20 = arith.constant 0 : index
      %c0_21 = arith.constant 0 : index
      %42 = vector.load %arg10[%c0_20, %c0_21] : memref<16x1xf32, #tpu.memory_space<vmem>>, vector<16x1xf32>
      %cst_22 = arith.constant dense<0xFF800000> : vector<16xf32>
      %43 = vector.multi_reduction <maximumf>, %41, %cst_22 [1] : vector<16x8xf32> to vector<16xf32>
      %44 = vector.shape_cast %43 : vector<16xf32> to vector<16x1xf32>
      %45 = arith.maximumf %42, %44 : vector<16x1xf32>
      %46 = arith.subf %42, %45 : vector<16x1xf32>
      %47 = math.exp %46 : vector<16x1xf32>
      %48 = vector.broadcast %45 : vector<16x1xf32> to vector<16x8xf32>
      %49 = arith.subf %41, %48 : vector<16x8xf32>
      %50 = math.exp %49 : vector<16x8xf32>
      %c0_23 = arith.constant 0 : index
      %c0_24 = arith.constant 0 : index
      %51 = vector.load %arg11[%c0_23, %c0_24] : memref<16x1xf32, #tpu.memory_space<vmem>>, vector<16x1xf32>
      %52 = arith.mulf %47, %51 : vector<16x1xf32>
      %cst_25 = arith.constant dense<0.000000e+00> : vector<16xf32>
      %53 = vector.multi_reduction <add>, %50, %cst_25 [1] : vector<16x8xf32> to vector<16xf32>
      %54 = vector.shape_cast %53 : vector<16xf32> to vector<16x1xf32>
      %55 = arith.addf %52, %54 : vector<16x1xf32>
      %c0_26 = arith.constant 0 : index
      %c0_27 = arith.constant 0 : index
      %56 = vector.load %arg11[%c0_26, %c0_27] : memref<16x1xf32, #tpu.memory_space<vmem>>, vector<16x1xf32>
      tpu.vector_store %arg11[%c0_26, %c0_27], %55 {strides = array<i32>} : memref<16x1xf32, #tpu.memory_space<vmem>>, vector<16x1xf32>,
      %c0_28 = arith.constant 0 : index
      %c0_29 = arith.constant 0 : index
      %57 = vector.load %arg12[%c0_28, %c0_29] : memref<16x16xf32, #tpu.memory_space<vmem>>, vector<16x16xf32>
      %58 = vector.broadcast %47 : vector<16x1xf32> to vector<16x16xf32>
      %59 = arith.mulf %58, %57 : vector<16x16xf32>
      %60 = arith.truncf %50 : vector<16x8xf32> to vector<16x8xbf16>
      %cst_30 = arith.constant dense<0.000000e+00> : vector<16x16xf32>
      %61 = tpu.matmul %60, %12, %cst_30 {dimension_numbers = #tpu.dot_dimension_numbers<[1], [0], [0], [1], [0, 0, 1, 1], [], []>} : vector<16x8xbf16>, vector<8x16xbf16>, vector<16x16xf32> -> vector<16x16xf32>
      %62 = arith.addf %59, %61 : vector<16x16xf32>
      %c0_31 = arith.constant 0 : index
      %c0_32 = arith.constant 0 : index
      %63 = vector.load %arg12[%c0_31, %c0_32] : memref<16x16xf32, #tpu.memory_space<vmem>>, vector<16x16xf32>
      tpu.vector_store %arg12[%c0_31, %c0_32], %62 {strides = array<i32>} : memref<16x16xf32, #tpu.memory_space<vmem>>, vector<16x16xf32>,
      %c0_33 = arith.constant 0 : index
      %c0_34 = arith.constant 0 : index
      %64 = vector.load %arg10[%c0_33, %c0_34] : memref<16x1xf32, #tpu.memory_space<vmem>>, vector<16x1xf32>
      tpu.vector_store %arg10[%c0_33, %c0_34], %45 {strides = array<i32>} : memref<16x1xf32, #tpu.memory_space<vmem>>, vector<16x1xf32>,
    } else {
    }
    %true = arith.constant true
    %19 = arith.xori %16, %true : i1
    %20 = arith.extui %19 : i1 to i32
    %c0_i32_14 = arith.constant 0 : i32
    %21 = arith.cmpi ne, %20, %c0_i32_14 : i32
    scf.if %21 {
      %cst = arith.constant dense<0.000000e+00> : vector<16x8xf32>
      %27 = tpu.matmul %8, %10, %cst {dimension_numbers = #tpu.dot_dimension_numbers<[1], [1], [0], [0], [0, 0, 1, 0], [], []>} : vector<16x16xbf16>, vector<8x16xbf16>, vector<16x8xf32> -> vector<16x8xf32>
      %cst_16 = arith.constant 2.500000e-01 : f32
      %28 = vector.broadcast %cst_16 : f32 to vector<16x8xf32>
      %29 = arith.mulf %27, %28 : vector<16x8xf32>
      %c0_17 = arith.constant 0 : index
      %c0_18 = arith.constant 0 : index
      %30 = vector.load %arg10[%c0_17, %c0_18] : memref<16x1xf32, #tpu.memory_space<vmem>>, vector<16x1xf32>
      %cst_19 = arith.constant dense<0xFF800000> : vector<16xf32>
      %31 = vector.multi_reduction <maximumf>, %29, %cst_19 [1] : vector<16x8xf32> to vector<16xf32>
      %32 = vector.shape_cast %31 : vector<16xf32> to vector<16x1xf32>
      %33 = arith.maximumf %30, %32 : vector<16x1xf32>
      %34 = arith.subf %30, %33 : vector<16x1xf32>
      %35 = math.exp %34 : vector<16x1xf32>
      %36 = vector.broadcast %33 : vector<16x1xf32> to vector<16x8xf32>
      %37 = arith.subf %29, %36 : vector<16x8xf32>
      %38 = math.exp %37 : vector<16x8xf32>
      %c0_20 = arith.constant 0 : index
      %c0_21 = arith.constant 0 : index
      %39 = vector.load %arg11[%c0_20, %c0_21] : memref<16x1xf32, #tpu.memory_space<vmem>>, vector<16x1xf32>
      %40 = arith.mulf %35, %39 : vector<16x1xf32>
      %cst_22 = arith.constant dense<0.000000e+00> : vector<16xf32>
      %41 = vector.multi_reduction <add>, %38, %cst_22 [1] : vector<16x8xf32> to vector<16xf32>
      %42 = vector.shape_cast %41 : vector<16xf32> to vector<16x1xf32>
      %43 = arith.addf %40, %42 : vector<16x1xf32>
      %c0_23 = arith.constant 0 : index
      %c0_24 = arith.constant 0 : index
      %44 = vector.load %arg11[%c0_23, %c0_24] : memref<16x1xf32, #tpu.memory_space<vmem>>, vector<16x1xf32>
      tpu.vector_store %arg11[%c0_23, %c0_24], %43 {strides = array<i32>} : memref<16x1xf32, #tpu.memory_space<vmem>>, vector<16x1xf32>,
      %c0_25 = arith.constant 0 : index
      %c0_26 = arith.constant 0 : index
      %45 = vector.load %arg12[%c0_25, %c0_26] : memref<16x16xf32, #tpu.memory_space<vmem>>, vector<16x16xf32>
      %46 = vector.broadcast %35 : vector<16x1xf32> to vector<16x16xf32>
      %47 = arith.mulf %46, %45 : vector<16x16xf32>
      %48 = arith.truncf %38 : vector<16x8xf32> to vector<16x8xbf16>
      %cst_27 = arith.constant dense<0.000000e+00> : vector<16x16xf32>
      %49 = tpu.matmul %48, %12, %cst_27 {dimension_numbers = #tpu.dot_dimension_numbers<[1], [0], [0], [1], [0, 0, 1, 1], [], []>} : vector<16x8xbf16>, vector<8x16xbf16>, vector<16x16xf32> -> vector<16x16xf32>
      %50 = arith.addf %47, %49 : vector<16x16xf32>
      %c0_28 = arith.constant 0 : index
      %c0_29 = arith.constant 0 : index
      %51 = vector.load %arg12[%c0_28, %c0_29] : memref<16x16xf32, #tpu.memory_space<vmem>>, vector<16x16xf32>
      tpu.vector_store %arg12[%c0_28, %c0_29], %50 {strides = array<i32>} : memref<16x16xf32, #tpu.memory_space<vmem>>, vector<16x16xf32>,
      %c0_30 = arith.constant 0 : index
      %c0_31 = arith.constant 0 : index
      %52 = vector.load %arg10[%c0_30, %c0_31] : memref<16x1xf32, #tpu.memory_space<vmem>>, vector<16x1xf32>
      tpu.vector_store %arg10[%c0_30, %c0_31], %33 {strides = array<i32>} : memref<16x1xf32, #tpu.memory_space<vmem>>, vector<16x1xf32>,
    } else {
    }
    %22 = arith.index_cast %arg2 : i32 to index
    %23 = memref.load %arg5[%22] : memref<1xi32, #tpu.memory_space<smem>>
    %c1_i32 = arith.constant 1 : i32
    %24 = arith.cmpi eq, %23, %c1_i32 : i32
    %25 = arith.extui %24 : i1 to i32
    %c0_i32_15 = arith.constant 0 : i32
    %26 = arith.cmpi ne, %25, %c0_i32_15 : i32
    scf.if %26 {
      %c0_16 = arith.constant 0 : index
      %c0_17 = arith.constant 0 : index
      %27 = vector.load %arg12[%c0_16, %c0_17] : memref<16x16xf32, #tpu.memory_space<vmem>>, vector<16x16xf32>
      %c0_18 = arith.constant 0 : index
      %c0_19 = arith.constant 0 : index
      %28 = vector.load %arg11[%c0_18, %c0_19] : memref<16x1xf32, #tpu.memory_space<vmem>>, vector<16x1xf32>
      %29 = tpu.reciprocal %28 {approx = true} : vector<16x1xf32> -> vector<16x1xf32>
      %30 = vector.broadcast %29 : vector<16x1xf32> to vector<16x16xf32>
      %31 = arith.mulf %27, %30 : vector<16x16xf32>
      %32 = arith.truncf %31 : vector<16x16xf32> to vector<16x16xbf16>
      %33 = vector.shape_cast %32 : vector<16x16xbf16> to vector<1x2x8x16xbf16>
      %c0_20 = arith.constant 0 : index
      %c0_21 = arith.constant 0 : index
      %c0_22 = arith.constant 0 : index
      %c0_23 = arith.constant 0 : index
      %34 = vector.load %arg9[%c0_20, %c0_21, %c0_22, %c0_23] : memref<1x2x8x16xbf16, #tpu.memory_space<vmem>>, vector<1x2x8x16xbf16>
      tpu.vector_store %arg9[%c0_20, %c0_21, %c0_22, %c0_23], %33 {strides = array<i32>} : memref<1x2x8x16xbf16, #tpu.memory_space<vmem>>, vector<1x2x8x16xbf16>,
    } else {
    }
    return
  }
  func.func @transform_0(%arg0: i32, %arg1: i32, %arg2: i32, %arg3: memref<1xi32, #tpu.memory_space<smem>>, %arg4: memref<1xi32, #tpu.memory_space<smem>>, %arg5: memref<1xi32, #tpu.memory_space<smem>>) -> (i32, i32, i32, i32) {
    %0 = arith.index_cast %arg2 : i32 to index
    %1 = memref.load %arg3[%0] : memref<1xi32, #tpu.memory_space<smem>>
    %c0_i32 = arith.constant 0 : i32
    %c0_i32_0 = arith.constant 0 : i32
    return %arg0, %arg1, %1, %c0_i32 : i32, i32, i32, i32
  }
  func.func @transform_1(%arg0: i32, %arg1: i32, %arg2: i32, %arg3: memref<1xi32, #tpu.memory_space<smem>>, %arg4: memref<1xi32, #tpu.memory_space<smem>>, %arg5: memref<1xi32, #tpu.memory_space<smem>>) -> (i32, i32, i32, i32) {
    %0 = arith.index_cast %arg2 : i32 to index
    %1 = memref.load %arg4[%0] : memref<1xi32, #tpu.memory_space<smem>>
    %c0_i32 = arith.constant 0 : i32
    %c0_i32_0 = arith.constant 0 : i32
    return %arg0, %arg1, %1, %c0_i32 : i32, i32, i32, i32
  }
  func.func @transform_2(%arg0: i32, %arg1: i32, %arg2: i32, %arg3: memref<1xi32, #tpu.memory_space<smem>>, %arg4: memref<1xi32, #tpu.memory_space<smem>>, %arg5: memref<1xi32, #tpu.memory_space<smem>>) -> (i32, i32, i32, i32) {
    %0 = arith.index_cast %arg2 : i32 to index
    %1 = memref.load %arg4[%0] : memref<1xi32, #tpu.memory_space<smem>>
    %c0_i32 = arith.constant 0 : i32
    %c0_i32_0 = arith.constant 0 : i32
    return %arg0, %arg1, %1, %c0_i32 : i32, i32, i32, i32
  }
  func.func @transform_3(%arg0: i32, %arg1: i32, %arg2: i32, %arg3: memref<1xi32, #tpu.memory_space<smem>>, %arg4: memref<1xi32, #tpu.memory_space<smem>>, %arg5: memref<1xi32, #tpu.memory_space<smem>>) -> (i32, i32, i32, i32) {
    %0 = arith.index_cast %arg2 : i32 to index
    %1 = memref.load %arg3[%0] : memref<1xi32, #tpu.memory_space<smem>>
    %c0_i32 = arith.constant 0 : i32
    %c0_i32_0 = arith.constant 0 : i32
    return %arg0, %arg1, %1, %c0_i32 : i32, i32, i32, i32
  }
}

module attributes {stable_mosaic.version = 11 : i64} {
  func.func @_matmul_kernel(%arg0: i32, %arg1: i32, %arg2: i32, %arg3: memref<16x64xbf16, #tpu.memory_space<vmem>>, %arg4: memref<64x64xbf16, #tpu.memory_space<vmem>>, %arg5: memref<16x64xbf16, #tpu.memory_space<vmem>>, %arg6: memref<16x64xf32, #tpu.memory_space<vmem>>) attributes {dimension_semantics = [#tpu.dimension_semantics<parallel>, #tpu.dimension_semantics<parallel>, #tpu.dimension_semantics<arbitrary>], iteration_bounds = array<i64: 1, 1, 1>, scalar_prefetch = 0 : i64, scratch_operands = 1 : i64, tpu.core_type = #tpu.core_type<tc>, window_params = [{transform_indices = @transform_0, window_bounds = array<i64: 16, 64>}, {transform_indices = @transform_1, window_bounds = array<i64: 64, 64>}, {transform_indices = @transform_2, window_bounds = array<i64: 16, 64>}]} {
    %c0_i32 = arith.constant 0 : i32
    %0 = arith.cmpi eq, %arg2, %c0_i32 : i32
    %1 = arith.extui %0 : i1 to i32
    %c0_i32_0 = arith.constant 0 : i32
    %2 = arith.cmpi ne, %1, %c0_i32_0 : i32
    scf.if %2 {
      %cst_10 = arith.constant 0.000000e+00 : f32
      %12 = vector.broadcast %cst_10 : f32 to vector<16x64xf32>
      %c0_11 = arith.constant 0 : index
      %c0_12 = arith.constant 0 : index
      %13 = vector.load %arg6[%c0_11, %c0_12] : memref<16x64xf32, #tpu.memory_space<vmem>>, vector<16x64xf32>
      tpu.vector_store %arg6[%c0_11, %c0_12], %12 {strides = array<i32>} : memref<16x64xf32, #tpu.memory_space<vmem>>, vector<16x64xf32>,
    } else {
    }
    %c0 = arith.constant 0 : index
    %c0_1 = arith.constant 0 : index
    %3 = vector.load %arg6[%c0, %c0_1] : memref<16x64xf32, #tpu.memory_space<vmem>>, vector<16x64xf32>
    %c0_2 = arith.constant 0 : index
    %c0_3 = arith.constant 0 : index
    %4 = vector.load %arg3[%c0_2, %c0_3] : memref<16x64xbf16, #tpu.memory_space<vmem>>, vector<16x64xbf16>
    %c0_4 = arith.constant 0 : index
    %c0_5 = arith.constant 0 : index
    %5 = vector.load %arg4[%c0_4, %c0_5] : memref<64x64xbf16, #tpu.memory_space<vmem>>, vector<64x64xbf16>
    %cst = arith.constant dense<0.000000e+00> : vector<16x64xf32>
    %6 = tpu.matmul %4, %5, %cst {dimension_numbers = #tpu.dot_dimension_numbers<[1], [0], [0], [1], [0, 0, 1, 1], [], []>} : vector<16x64xbf16>, vector<64x64xbf16>, vector<16x64xf32> -> vector<16x64xf32>
    %7 = arith.addf %3, %6 : vector<16x64xf32>
    %c0_6 = arith.constant 0 : index
    %c0_7 = arith.constant 0 : index
    %8 = vector.load %arg6[%c0_6, %c0_7] : memref<16x64xf32, #tpu.memory_space<vmem>>, vector<16x64xf32>
    tpu.vector_store %arg6[%c0_6, %c0_7], %7 {strides = array<i32>} : memref<16x64xf32, #tpu.memory_space<vmem>>, vector<16x64xf32>,
    %c0_i32_8 = arith.constant 0 : i32
    %9 = arith.cmpi eq, %arg2, %c0_i32_8 : i32
    %10 = arith.extui %9 : i1 to i32
    %c0_i32_9 = arith.constant 0 : i32
    %11 = arith.cmpi ne, %10, %c0_i32_9 : i32
    scf.if %11 {
      %c0_10 = arith.constant 0 : index
      %c0_11 = arith.constant 0 : index
      %12 = vector.load %arg6[%c0_10, %c0_11] : memref<16x64xf32, #tpu.memory_space<vmem>>, vector<16x64xf32>
      %13 = arith.truncf %12 : vector<16x64xf32> to vector<16x64xbf16>
      %c0_12 = arith.constant 0 : index
      %c0_13 = arith.constant 0 : index
      %14 = vector.load %arg5[%c0_12, %c0_13] : memref<16x64xbf16, #tpu.memory_space<vmem>>, vector<16x64xbf16>
      tpu.vector_store %arg5[%c0_12, %c0_13], %13 {strides = array<i32>} : memref<16x64xbf16, #tpu.memory_space<vmem>>, vector<16x64xbf16>,
    } else {
    }
    return
  }
  func.func @transform_0(%arg0: i32, %arg1: i32, %arg2: i32) -> (i32, i32) {
    %c0_i32 = arith.constant 0 : i32
    return %arg0, %arg2 : i32, i32
  }
  func.func @transform_1(%arg0: i32, %arg1: i32, %arg2: i32) -> (i32, i32) {
    %c0_i32 = arith.constant 0 : i32
    return %arg2, %arg1 : i32, i32
  }
  func.func @transform_2(%arg0: i32, %arg1: i32, %arg2: i32) -> (i32, i32) {
    %c0_i32 = arith.constant 0 : i32
    return %arg0, %arg1 : i32, i32
  }
}

module attributes {stable_mosaic.version = 11 : i64} {
  func.func @_ffn_kernel(%arg0: i32, %arg1: i32, %arg2: memref<16x64xbf16, #tpu.memory_space<vmem>>, %arg3: memref<1x64xbf16, #tpu.memory_space<vmem>>, %arg4: memref<64x128xbf16, #tpu.memory_space<vmem>>, %arg5: memref<64x128xbf16, #tpu.memory_space<vmem>>, %arg6: memref<128x64xbf16, #tpu.memory_space<vmem>>, %arg7: memref<16x64xbf16, #tpu.memory_space<vmem>>, %arg8: memref<16x64xbf16, #tpu.memory_space<vmem>>, %arg9: memref<16x64xf32, #tpu.memory_space<vmem>>) attributes {dimension_semantics = [#tpu.dimension_semantics<parallel>, #tpu.dimension_semantics<arbitrary>], iteration_bounds = array<i64: 1, 1>, scalar_prefetch = 0 : i64, scratch_operands = 2 : i64, tpu.core_type = #tpu.core_type<tc>, window_params = [{transform_indices = @transform_0, window_bounds = array<i64: 16, 64>}, {pipeline_mode = #tpu.pipeline_mode<synchronous>, transform_indices = @transform_1, window_bounds = array<i64: 1, 64>}, {transform_indices = @transform_2, window_bounds = array<i64: 64, 128>}, {transform_indices = @transform_3, window_bounds = array<i64: 64, 128>}, {transform_indices = @transform_4, window_bounds = array<i64: 128, 64>}, {transform_indices = @transform_5, window_bounds = array<i64: 16, 64>}]} {
    %c0_i32 = arith.constant 0 : i32
    %0 = arith.cmpi eq, %arg1, %c0_i32 : i32
    %1 = arith.extui %0 : i1 to i32
    %c0_i32_0 = arith.constant 0 : i32
    %2 = arith.cmpi ne, %1, %c0_i32_0 : i32
    scf.if %2 {
      %c0_18 = arith.constant 0 : index
      %c0_19 = arith.constant 0 : index
      %24 = vector.load %arg2[%c0_18, %c0_19] : memref<16x64xbf16, #tpu.memory_space<vmem>>, vector<16x64xbf16>
      %25 = arith.extf %24 : vector<16x64xbf16> to vector<16x64xf32>
      %26 = arith.mulf %25, %25 : vector<16x64xf32>
      %cst_20 = arith.constant dense<0.000000e+00> : vector<16xf32>
      %27 = vector.multi_reduction <add>, %26, %cst_20 [1] : vector<16x64xf32> to vector<16xf32>
      %28 = vector.shape_cast %27 : vector<16xf32> to vector<16x1xf32>
      %cst_21 = arith.constant 6.400000e+01 : f32
      %29 = vector.broadcast %cst_21 : f32 to vector<16x1xf32>
      %30 = arith.divf %28, %29 : vector<16x1xf32>
      %cst_22 = arith.constant 9.99999974E-6 : f32
      %31 = vector.broadcast %cst_22 : f32 to vector<16x1xf32>
      %32 = arith.addf %30, %31 : vector<16x1xf32>
      %33 = math.rsqrt %32 : vector<16x1xf32>
      %34 = vector.broadcast %33 : vector<16x1xf32> to vector<16x64xf32>
      %35 = arith.mulf %25, %34 : vector<16x64xf32>
      %36 = arith.truncf %35 : vector<16x64xf32> to vector<16x64xbf16>
      %c0_23 = arith.constant 0 : index
      %c0_24 = arith.constant 0 : index
      %37 = vector.load %arg3[%c0_23, %c0_24] : memref<1x64xbf16, #tpu.memory_space<vmem>>, vector<1x64xbf16>
      %38 = vector.broadcast %37 : vector<1x64xbf16> to vector<16x64xbf16>
      %39 = arith.mulf %36, %38 : vector<16x64xbf16>
      %c0_25 = arith.constant 0 : index
      %c0_26 = arith.constant 0 : index
      %40 = vector.load %arg8[%c0_25, %c0_26] : memref<16x64xbf16, #tpu.memory_space<vmem>>, vector<16x64xbf16>
      tpu.vector_store %arg8[%c0_25, %c0_26], %39 {strides = array<i32>} : memref<16x64xbf16, #tpu.memory_space<vmem>>, vector<16x64xbf16>,
      %cst_27 = arith.constant 0.000000e+00 : f32
      %41 = vector.broadcast %cst_27 : f32 to vector<16x64xf32>
      %c0_28 = arith.constant 0 : index
      %c0_29 = arith.constant 0 : index
      %42 = vector.load %arg9[%c0_28, %c0_29] : memref<16x64xf32, #tpu.memory_space<vmem>>, vector<16x64xf32>
      tpu.vector_store %arg9[%c0_28, %c0_29], %41 {strides = array<i32>} : memref<16x64xf32, #tpu.memory_space<vmem>>, vector<16x64xf32>,
    } else {
    }
    %c0 = arith.constant 0 : index
    %c0_1 = arith.constant 0 : index
    %3 = vector.load %arg8[%c0, %c0_1] : memref<16x64xbf16, #tpu.memory_space<vmem>>, vector<16x64xbf16>
    %c0_2 = arith.constant 0 : index
    %c0_3 = arith.constant 0 : index
    %4 = vector.load %arg4[%c0_2, %c0_3] : memref<64x128xbf16, #tpu.memory_space<vmem>>, vector<64x128xbf16>
    %cst = arith.constant dense<0.000000e+00> : vector<16x128xf32>
    %5 = tpu.matmul %3, %4, %cst {dimension_numbers = #tpu.dot_dimension_numbers<[1], [0], [0], [1], [0, 0, 1, 1], [], []>} : vector<16x64xbf16>, vector<64x128xbf16>, vector<16x128xf32> -> vector<16x128xf32>
    %c0_4 = arith.constant 0 : index
    %c0_5 = arith.constant 0 : index
    %6 = vector.load %arg5[%c0_4, %c0_5] : memref<64x128xbf16, #tpu.memory_space<vmem>>, vector<64x128xbf16>
    %cst_6 = arith.constant dense<0.000000e+00> : vector<16x128xf32>
    %7 = tpu.matmul %3, %6, %cst_6 {dimension_numbers = #tpu.dot_dimension_numbers<[1], [0], [0], [1], [0, 0, 1, 1], [], []>} : vector<16x64xbf16>, vector<64x128xbf16>, vector<16x128xf32> -> vector<16x128xf32>
    %cst_7 = arith.constant 0.000000e+00 : f32
    %8 = vector.broadcast %cst_7 : f32 to vector<16x128xf32>
    %9 = arith.subf %8, %5 : vector<16x128xf32>
    %10 = math.exp %9 : vector<16x128xf32>
    %cst_8 = arith.constant 1.000000e+00 : f32
    %11 = vector.broadcast %cst_8 : f32 to vector<16x128xf32>
    %12 = arith.addf %11, %10 : vector<16x128xf32>
    %13 = arith.divf %5, %12 : vector<16x128xf32>
    %14 = arith.mulf %13, %7 : vector<16x128xf32>
    %c0_9 = arith.constant 0 : index
    %c0_10 = arith.constant 0 : index
    %15 = vector.load %arg9[%c0_9, %c0_10] : memref<16x64xf32, #tpu.memory_space<vmem>>, vector<16x64xf32>
    %16 = arith.truncf %14 : vector<16x128xf32> to vector<16x128xbf16>
    %c0_11 = arith.constant 0 : index
    %c0_12 = arith.constant 0 : index
    %17 = vector.load %arg6[%c0_11, %c0_12] : memref<128x64xbf16, #tpu.memory_space<vmem>>, vector<128x64xbf16>
    %cst_13 = arith.constant dense<0.000000e+00> : vector<16x64xf32>
    %18 = tpu.matmul %16, %17, %cst_13 {dimension_numbers = #tpu.dot_dimension_numbers<[1], [0], [0], [1], [0, 0, 1, 1], [], []>} : vector<16x128xbf16>, vector<128x64xbf16>, vector<16x64xf32> -> vector<16x64xf32>
    %19 = arith.addf %15, %18 : vector<16x64xf32>
    %c0_14 = arith.constant 0 : index
    %c0_15 = arith.constant 0 : index
    %20 = vector.load %arg9[%c0_14, %c0_15] : memref<16x64xf32, #tpu.memory_space<vmem>>, vector<16x64xf32>
    tpu.vector_store %arg9[%c0_14, %c0_15], %19 {strides = array<i32>} : memref<16x64xf32, #tpu.memory_space<vmem>>, vector<16x64xf32>,
    %c0_i32_16 = arith.constant 0 : i32
    %21 = arith.cmpi eq, %arg1, %c0_i32_16 : i32
    %22 = arith.extui %21 : i1 to i32
    %c0_i32_17 = arith.constant 0 : i32
    %23 = arith.cmpi ne, %22, %c0_i32_17 : i32
    scf.if %23 {
      %c0_18 = arith.constant 0 : index
      %c0_19 = arith.constant 0 : index
      %24 = vector.load %arg9[%c0_18, %c0_19] : memref<16x64xf32, #tpu.memory_space<vmem>>, vector<16x64xf32>
      %25 = arith.truncf %24 : vector<16x64xf32> to vector<16x64xbf16>
      %c0_20 = arith.constant 0 : index
      %c0_21 = arith.constant 0 : index
      %26 = vector.load %arg7[%c0_20, %c0_21] : memref<16x64xbf16, #tpu.memory_space<vmem>>, vector<16x64xbf16>
      tpu.vector_store %arg7[%c0_20, %c0_21], %25 {strides = array<i32>} : memref<16x64xbf16, #tpu.memory_space<vmem>>, vector<16x64xbf16>,
    } else {
    }
    return
  }
  func.func @transform_0(%arg0: i32, %arg1: i32) -> (i32, i32) {
    %c0_i32 = arith.constant 0 : i32
    %c0_i32_0 = arith.constant 0 : i32
    return %arg0, %c0_i32 : i32, i32
  }
  func.func @transform_1(%arg0: i32, %arg1: i32) -> (i32, i32) {
    %c0_i32 = arith.constant 0 : i32
    %c0_i32_0 = arith.constant 0 : i32
    %c0_i32_1 = arith.constant 0 : i32
    return %c0_i32, %c0_i32_0 : i32, i32
  }
  func.func @transform_2(%arg0: i32, %arg1: i32) -> (i32, i32) {
    %c0_i32 = arith.constant 0 : i32
    %c0_i32_0 = arith.constant 0 : i32
    return %c0_i32, %arg1 : i32, i32
  }
  func.func @transform_3(%arg0: i32, %arg1: i32) -> (i32, i32) {
    %c0_i32 = arith.constant 0 : i32
    %c0_i32_0 = arith.constant 0 : i32
    return %c0_i32, %arg1 : i32, i32
  }
  func.func @transform_4(%arg0: i32, %arg1: i32) -> (i32, i32) {
    %c0_i32 = arith.constant 0 : i32
    %c0_i32_0 = arith.constant 0 : i32
    return %arg1, %c0_i32 : i32, i32
  }
  func.func @transform_5(%arg0: i32, %arg1: i32) -> (i32, i32) {
    %c0_i32 = arith.constant 0 : i32
    %c0_i32_0 = arith.constant 0 : i32
    return %arg0, %c0_i32 : i32, i32
  }
}

module attributes {stable_mosaic.version = 11 : i64} {
  func.func @_rms_matmul_kernel(%arg0: i32, %arg1: i32, %arg2: memref<16x64xbf16, #tpu.memory_space<vmem>>, %arg3: memref<1x64xbf16, #tpu.memory_space<vmem>>, %arg4: memref<64x96xbf16, #tpu.memory_space<vmem>>, %arg5: memref<16x96xf32, #tpu.memory_space<vmem>>, %arg6: memref<16x64xbf16, #tpu.memory_space<vmem>>) attributes {dimension_semantics = [#tpu.dimension_semantics<parallel>, #tpu.dimension_semantics<arbitrary>], iteration_bounds = array<i64: 1, 1>, scalar_prefetch = 0 : i64, scratch_operands = 1 : i64, tpu.core_type = #tpu.core_type<tc>, window_params = [{transform_indices = @transform_0, window_bounds = array<i64: 16, 64>}, {pipeline_mode = #tpu.pipeline_mode<synchronous>, transform_indices = @transform_1, window_bounds = array<i64: 1, 64>}, {transform_indices = @transform_2, window_bounds = array<i64: 64, 96>}, {transform_indices = @transform_3, window_bounds = array<i64: 16, 96>}]} {
    %c0_i32 = arith.constant 0 : i32
    %0 = arith.cmpi eq, %arg1, %c0_i32 : i32
    %1 = arith.extui %0 : i1 to i32
    %c0_i32_0 = arith.constant 0 : i32
    %2 = arith.cmpi ne, %1, %c0_i32_0 : i32
    scf.if %2 {
      %c0_6 = arith.constant 0 : index
      %c0_7 = arith.constant 0 : index
      %7 = vector.load %arg2[%c0_6, %c0_7] : memref<16x64xbf16, #tpu.memory_space<vmem>>, vector<16x64xbf16>
      %8 = arith.extf %7 : vector<16x64xbf16> to vector<16x64xf32>
      %9 = arith.mulf %8, %8 : vector<16x64xf32>
      %cst_8 = arith.constant dense<0.000000e+00> : vector<16xf32>
      %10 = vector.multi_reduction <add>, %9, %cst_8 [1] : vector<16x64xf32> to vector<16xf32>
      %11 = vector.shape_cast %10 : vector<16xf32> to vector<16x1xf32>
      %cst_9 = arith.constant 6.400000e+01 : f32
      %12 = vector.broadcast %cst_9 : f32 to vector<16x1xf32>
      %13 = arith.divf %11, %12 : vector<16x1xf32>
      %cst_10 = arith.constant 9.99999974E-6 : f32
      %14 = vector.broadcast %cst_10 : f32 to vector<16x1xf32>
      %15 = arith.addf %13, %14 : vector<16x1xf32>
      %16 = math.rsqrt %15 : vector<16x1xf32>
      %17 = vector.broadcast %16 : vector<16x1xf32> to vector<16x64xf32>
      %18 = arith.mulf %8, %17 : vector<16x64xf32>
      %19 = arith.truncf %18 : vector<16x64xf32> to vector<16x64xbf16>
      %c0_11 = arith.constant 0 : index
      %c0_12 = arith.constant 0 : index
      %20 = vector.load %arg3[%c0_11, %c0_12] : memref<1x64xbf16, #tpu.memory_space<vmem>>, vector<1x64xbf16>
      %21 = vector.broadcast %20 : vector<1x64xbf16> to vector<16x64xbf16>
      %22 = arith.mulf %19, %21 : vector<16x64xbf16>
      %c0_13 = arith.constant 0 : index
      %c0_14 = arith.constant 0 : index
      %23 = vector.load %arg6[%c0_13, %c0_14] : memref<16x64xbf16, #tpu.memory_space<vmem>>, vector<16x64xbf16>
      tpu.vector_store %arg6[%c0_13, %c0_14], %22 {strides = array<i32>} : memref<16x64xbf16, #tpu.memory_space<vmem>>, vector<16x64xbf16>,
    } else {
    }
    %c0 = arith.constant 0 : index
    %c0_1 = arith.constant 0 : index
    %3 = vector.load %arg6[%c0, %c0_1] : memref<16x64xbf16, #tpu.memory_space<vmem>>, vector<16x64xbf16>
    %c0_2 = arith.constant 0 : index
    %c0_3 = arith.constant 0 : index
    %4 = vector.load %arg4[%c0_2, %c0_3] : memref<64x96xbf16, #tpu.memory_space<vmem>>, vector<64x96xbf16>
    %cst = arith.constant dense<0.000000e+00> : vector<16x96xf32>
    %5 = tpu.matmul %3, %4, %cst {dimension_numbers = #tpu.dot_dimension_numbers<[1], [0], [0], [1], [0, 0, 1, 1], [], []>} : vector<16x64xbf16>, vector<64x96xbf16>, vector<16x96xf32> -> vector<16x96xf32>
    %c0_4 = arith.constant 0 : index
    %c0_5 = arith.constant 0 : index
    %6 = vector.load %arg5[%c0_4, %c0_5] : memref<16x96xf32, #tpu.memory_space<vmem>>, vector<16x96xf32>
    tpu.vector_store %arg5[%c0_4, %c0_5], %5 {strides = array<i32>} : memref<16x96xf32, #tpu.memory_space<vmem>>, vector<16x96xf32>,
    return
  }
  func.func @transform_0(%arg0: i32, %arg1: i32) -> (i32, i32) {
    %c0_i32 = arith.constant 0 : i32
    %c0_i32_0 = arith.constant 0 : i32
    return %arg0, %c0_i32 : i32, i32
  }
  func.func @transform_1(%arg0: i32, %arg1: i32) -> (i32, i32) {
    %c0_i32 = arith.constant 0 : i32
    %c0_i32_0 = arith.constant 0 : i32
    %c0_i32_1 = arith.constant 0 : i32
    return %c0_i32, %c0_i32_0 : i32, i32
  }
  func.func @transform_2(%arg0: i32, %arg1: i32) -> (i32, i32) {
    %c0_i32 = arith.constant 0 : i32
    %c0_i32_0 = arith.constant 0 : i32
    return %c0_i32, %arg1 : i32, i32
  }
  func.func @transform_3(%arg0: i32, %arg1: i32) -> (i32, i32) {
    %c0_i32 = arith.constant 0 : i32
    return %arg0, %arg1 : i32, i32
  }
}

</mosaic_0001>

<bundles_post_ra>
// kernel: transformer_forward.9
= control target key start
LH: loop header
LB: loop body
LE: loop exit
PB: predicated region body
PF: predicated region fallthrough
CT: control target
= control target key end

     0   :  { %vm25_vm0 = vcmask 523264   ;;  %v189_v8 = vmov 0.0   ;;  %vm190_vm1 = vmmov 0   ;;  %v46_v18 = vlaneseq  ;;  %s236_s0 = inlined_call_operand.vmem [shape: bf16[16,64], index: 0, kind: input, shape index: {}]   ;;  %s237_s2 = inlined_call_operand.vmem [shape: bf16[64,128], index: 2, kind: input, shape index: {}]   ;;  %s238_s1 = inlined_call_operand.vmem [shape: bf16[1,64], index: 1, kind: input, shape index: {}]   ;;  %s239_s3 = inlined_call_operand.vmem [shape: bf16[16,128], index: 3, kind: output, shape index: {}]  }
   0x1   :  { %v154_v0 = vld [vmem:[%s236_s0] sm:$0xff]   ;;  %167 = vmatprep.subr.bf16.mxu0 %v189_v8  ;;  %v182_v9 = vld [vmem:[%s237_s2 + $0x8] sm:$0xff]   ;;  %v183_v10 = vld [vmem:[%s237_s2 + $0x10] sm:$0xff]   ;;  %175 = vmatprep.mubr.msk.bf16.mxu0 %vm190_vm1, %v189_v8 }
   0x2   :  { %v155_v1 = vunpack.c.l.bf16 %v154_v0  ;;  %v156_v2 = vunpack.c.h.bf16 %v154_v0  ;;  %v181_v7 = vld [vmem:[%s237_s2] sm:$0xff]   ;;  %v184_v11 = vld [vmem:[%s237_s2 + $0x18] sm:$0xff]   ;;  %v47_v19 = vshrl.u32 %v46_v18, 7 }
   0x3   :  { %168 = vmatpush3.bf16.msra.mxu0 %v181_v7  ;;  %v42_v20 = vld [vmem:[%s238_s1] sm:$0x1] }
   0x4   :  { %v23_v3 = vmul.f32 %v155_v1, %v155_v1  ;;  %v24_v4 = vmul.f32 %v156_v2, %v156_v2  ;;  %169 = vmatprep.subr.bf16.mxu0 %v189_v8  ;;  %v44_v21 = vpack.i.b16 %v42_v20, %v42_v20  ;;  %v48_v22 = vsub.s32 0, %v47_v19 }
   0x6   :  { %v26_v5 = vsel %vm25_vm0, %v23_v3, 0.0  ;;  %v29_v6 = vsel %vm25_vm0, %v24_v4, 0.0  ;;  %v49_v26 = vrot.slane %v44_v21, %v48_v22 }
   0x7   :  { %27 = vadd.xlane.f32.xlu0 %v26_v5  ;;  %170 = vmatpush3.bf16.msra.mxu0 %v182_v9 }
   0x8   :  { %171 = vmatprep.subr.bf16.mxu0 %v189_v8 }
   0xb   :  { %30 = vadd.xlane.f32.xlu0 %v29_v6  ;;  %172 = vmatpush3.bf16.msra.mxu0 %v183_v10 }
   0xc   :  { %173 = vmatprep.subr.bf16.mxu0 %v189_v8 }
   0xf   :  { %174 = vmatpush3.bf16.msra.mxu0 %v184_v11 }
  0x94   :  { %v28_v12 = vpop.xlane.xlu0 %27 }
  0x95   :  { %v33_v13 = vmul.f32 0.015625, %v28_v12 }
  0x97   :  { %v35_v14 = vadd.f32 1e-05, %v33_v13 }
  0x98   :  { %v31_v15 = vpop.xlane.xlu0 %30 }
  0x99   :  { %v34_v16 = vmul.f32 0.015625, %v31_v15  ;;  %185 = vrsqrt.f32 %v35_v14 }
  0x9b   :  { %v36_v17 = vadd.f32 1e-05, %v34_v16 }
  0x9d   :  { %187 = vrsqrt.f32 %v36_v17 }
  0xa3   :  { %v186_v23 = vpop.eup %185 }
  0xa4   :  { %v39_v25 = vmul.f32 %v186_v23, %v155_v1 }
  0xa7   :  { %v188_v24 = vpop.eup %187 }
  0xa8   :  { %v40_v27 = vmul.f32 %v188_v24, %v156_v2 }
  0xaa   :  { %v41_v28 = vpack.c.bf16 %v40_v27, %v39_v25 }
  0xac   :  { %v50_v29 = vmul.bf16 %v49_v26, %v41_v28 }
  0xae   :  { %51 = vst.msk [vmem:[#allocation2] sm:$0xff] %vm25_vm0, %v50_v29 }
  0xb5   :  { %v52_v30 = vld [vmem:[#allocation2] sm:$0xff] }
  0xb6   :  { %176 = vmatmul.mubr.msk.bf16.vlgmr.msra.gmra.mrb[0].mxu0 %vm25_vm0, %v52_v30 }
 0x189   :  { %v123_v31 = vpop.f32.mrb[0].mxu0 }
 0x18a   :  { %v177_v32 = vpop.f32.mrb[1].mxu0 }
 0x18b   :  { %v126_v33 = vpop.f32.mrb[2].mxu0 }
 0x18c   :  { %v160_v34 = vpack.c.bf16 %v126_v33, %v123_v31  ;;  %v178_v35 = vpop.f32.mrb[3].mxu0 }
 0x18e   :  { %161 = vst [vmem:[%s239_s3] sm:$0xff] %v160_v34  }

// kernel: transformer_forward.11
= control target key start
LH: loop header
LB: loop body
LE: loop exit
PB: predicated region body
PF: predicated region fallthrough
CT: control target
= control target key end

     0   :  { %vm16_vm0 = vcmask 523264   ;;  %v163_v0 = vmov 0.0   ;;  %vm164_vm1 = vmmov 0   ;;  %vm122_vm2 = vcmask 519168   ;;  %s206_s1 = inlined_call_operand.vmem [shape: bf16[64,64], index: 1, kind: input, shape index: {}]   ;;  %s207_s0 = inlined_call_operand.vmem [shape: bf16[16,64], index: 0, kind: input, shape index: {}]   ;;  %s208_s2 = inlined_call_operand.vmem [shape: bf16[16,64], index: 2, kind: output, shape index: {}]  }
   0x1   :  { %144 = vmatprep.subr.bf16.mxu0 %v163_v0  ;;  %v158_v1 = vld [vmem:[%s206_s1] sm:$0xff]   ;;  %152 = vmatprep.mubr.msk.bf16.mxu0 %vm164_vm1, %v163_v0  ;;  %17 = vst.msk [vmem:[#allocation2] sm:$0xff] %vm16_vm0, %v163_v0  ;;  %18 = vst.msk [vmem:[#allocation2 + $0x8] sm:$0xff] %vm16_vm0, %v163_v0  ;;  %v159_v2 = vld [vmem:[%s206_s1 + $0x8] sm:$0xff]  }
   0x2   :  { %145 = vmatpush3.bf16.msra.mxu0 %v158_v1  ;;  %v160_v3 = vld [vmem:[%s206_s1 + $0x10] sm:$0xff]   ;;  %v161_v4 = vld [vmem:[%s206_s1 + $0x18] sm:$0xff]   ;;  %v162_v5 = vld [vmem:[%s207_s0] sm:$0xff]  }
   0x3   :  { %146 = vmatprep.subr.bf16.mxu0 %v163_v0 }
   0x6   :  { %147 = vmatpush3.bf16.msra.mxu0 %v159_v2 }
   0x7   :  { %148 = vmatprep.subr.bf16.mxu0 %v163_v0 }
   0x8   :  { %v19_v6 = vld [vmem:[#allocation2] sm:$0xff]  ;;  %v20_v8 = vld [vmem:[#allocation2 + $0x8] sm:$0xff] }
   0xa   :  { %149 = vmatpush3.bf16.msra.mxu0 %v160_v3 }
   0xb   :  { %150 = vmatprep.subr.bf16.mxu0 %v163_v0 }
   0xe   :  { %151 = vmatpush3.bf16.msra.mxu0 %v161_v4 }
  0x11   :  { %153 = vmatmul.mubr.msk.bf16.vlgmr.msra.gmra.mrb[0].mxu0 %vm16_vm0, %v162_v5 }
  0xe4   :  { %v98_v7 = vpop.f32.mrb[0].mxu0 }
  0xe5   :  { %v105_v9 = vadd.f32 %v98_v7, %v19_v6  ;;  %v154_v10 = vpop.f32.mrb[1].mxu0 }
  0xe6   :  { %v101_v11 = vpop.f32.mrb[2].mxu0 }
  0xe7   :  { %107 = vst.msk [vmem:[#allocation2] sm:$0xff] %vm16_vm0, %v105_v9  ;;  %v106_v12 = vadd.f32 %v101_v11, %v20_v8  ;;  %v155_v13 = vpop.f32.mrb[3].mxu0 }
  0xe9   :  { %108 = vst.msk [vmem:[#allocation2 + $0x8] sm:$0xff] %vm16_vm0, %v106_v12 }
  0xee   :  { %v112_v14 = vld [vmem:[#allocation2] sm:$0xff] }
  0xef   :  { %v137_v15 = vpack.c.bf16 %v112_v14, %v112_v14 }
  0xf0   :  { %v113_v16 = vld [vmem:[#allocation2 + $0x8] sm:$0xff] }
  0xf1   :  { %123 = vst.msk [vmem:[%s208_s2] sm:$0xf] %vm122_vm2, %v137_v15  ;;  %v138_v17 = vpack.c.bf16 %v113_v16, %v113_v16 }
  0xf3   :  { %124 = vst.msk [vmem:[%s208_s2 + $0x4] sm:$0xf] %vm122_vm2, %v138_v17 }

// kernel: transformer_forward.10
= control target key start
LH: loop header
LB: loop body
LE: loop exit
PB: predicated region body
PF: predicated region fallthrough
CT: control target
= control target key end

     0   :  { %s1154_s27 = smov 0   ;;  %s1156_s28 = smov 0   ;;  %s1277_s0 = inlined_call_operand.<no memory space> [shape: s32[1], index: 0, kind: input, shape index: {}, may-alias: {0,1}]   ;;  %s1278_s1 = inlined_call_operand.<no memory space> [shape: s32[1], index: 1, kind: input, shape index: {}, may-alias: {0,1}]   ;;  %s1279_s2 = inlined_call_operand.<no memory space> [shape: s32[1], index: 2, kind: input, shape index: {}]   ;;  %s1280_s3 = inlined_call_operand.vmem [shape: bf16[2,4,8,16], index: 3, kind: input, shape index: {}]   ;;  %s1281_s4 = inlined_call_operand.vmem [shape: bf16[2,2,8,16], index: 4, kind: input, shape index: {}]   ;;  %s1282_s5 = inlined_call_operand.vmem [shape: bf16[2,2,8,16], index: 5, kind: input, shape index: {}]   ;;  %s1283_s6 = inlined_call_operand.vmem [shape: bf16[2,4,8,16], index: 6, kind: output, shape index: {}]  }
   0x1   :  { %11 = sst [smem:[#allocation6]] %s1277_s0  ;;  %s1158_s29 = smov 0  }
   0x2   :  { %12 = sst [smem:[#allocation7]] %s1278_s1  ;;  %s1160_s30 = smov 0  }
   0x3   :  { %13 = sst [smem:[#allocation8]] %s1279_s2  ;;  %s1162_s7 = smov 0  }
   0x4 LB: > { %s34_s0 = sadd.s32 1, %s1091_s29  ;;  %s38_s1 = sadd.s32 1, %s1095_s30  ;;  %s1099_s7 = sphi %s1162_s7, %s19_s7   ;;  %s1095_s30 = sphi %s1160_s30, %s1289_s30   ;;  %s1091_s29 = sphi %s1158_s29, %s1288_s29   ;;  %s1087_s28 = sphi %s1156_s28, %s1287_s28   ;;  %s1083_s27 = sphi %s1154_s27, %s1286_s27  }
   0x5   : > { %p36_p0 = scmp.ge.s32.totalorder %s34_s0, 2  ;;  %p926_p1 = scmp.ge.s32.totalorder %s1099_s7, 1 }
   0x6   : > { %p232_p2 = scmp.lt.s32.totalorder %s1099_s7, 5 }
   0x7   : > { %s1291_s0 = smov (%p36_p0, %s34_s0), 0  ;;  %s1293_s1 = smov (!%p36_p0, %s38_s1), %s1095_s30 }
   0x8   : > { %p233_p3 = pnand %p926_p1, %p232_p2  ;;  %p40_p4 = scmp.ge.s32.totalorder %s1293_s1, 2 }
   0x9   : > { %s1184_s2 = sld [smem:[#allocation6]] (!%p233_p3)  ;;  %s927_s8 = sshll.u32 (!%p233_p3), %s1083_s27, 1 }
   0xa   : > { %s1295_s1 = smov (%p40_p4, %s1293_s1), 0  ;;  %236 = sbr.rel (%p233_p3) target bundleno = 1662 (0x67e), region = 32 }
   0xb   : > { %1284 = sst [smem:[#allocation9_spill]] %s1295_s1  ;;  %p298_p5 = scmp.lt.s32.totalorder (!%p233_p3), %s1087_s28, 1 }
   0xc   : > { %p300_p6 = scmp.lt.s32.totalorder (!%p233_p3), %s927_s8, 3  ;;  %s1186_s9 = sld [smem:[#allocation7]] (!%p233_p3) }
   0xd   : > { %p314_p7 = scmp.lt.s32.totalorder (!%p233_p3), %s1083_s27, 1 }
   0xf   : > { %p302_p8 = scmp.lt.s32.totalorder (!%p233_p3), %s1184_s2, 0 }
  0x11   : > { %s1297_s28 = smov (!%p298_p5, %s1087_s28), 1  ;;  %s1299_s8 = smov (!%p300_p6, %s927_s8), 3 }
  0x12   : > { %s928_s10 = sshll.u32 %s1297_s28, 2  ;;  %s1301_s27 = smov (!%p314_p7, %s1083_s27), 1 }
  0x13   : > { %s303_s11 = scalar_select %p302_p8, %s1184_s2, 0 }
  0x14   : > { %p316_p9 = scmp.lt.s32.totalorder %s1186_s9, 0  ;;  %s930_s15 = sshll.u32 %s1297_s28, 1 }
  0x15   : > { %s304_s12 = sadd.s32 %s303_s11, %s1299_s8  ;;  %p937_p10 = scmp.ne.s32.totalorder %s1186_s9, 0 }
  0x16   : > { %s306_s13 = sadd.s32 %s928_s10, %s304_s12  ;;  %vm359_vm0 = vcmask (!%p937_p10), 7168   ;;  %vm364_vm1 = vcmask (!%p937_p10), 130048   ;;  %v1101_v0 = vmov (!%p937_p10), -1e+30   ;;  %v1102_v1 = vmov (!%p937_p10), 0.0  }
  0x17   : > { %s929_s14 = sshll.u32 %s306_s13, 2  ;;  %360 = vst.msk [vmem:[#allocation2] sm:$0xff] (!%p937_p10), %vm359_vm0, %v1101_v0  ;;  %361 = vst.msk [vmem:[#allocation2 + $0x8] sm:$0xff] (!%p937_p10), %vm359_vm0, %v1101_v0 }
  0x18   : > { %s308_s18 = scalar_lea.vmem %s1280_s3, %s929_s14  ;;  %s1197_s21 = scalar_lea.vmem %s1283_s6, %s929_s14  ;;  %362 = vst.msk [vmem:[#allocation3] sm:$0xff] (!%p937_p10), %vm359_vm0, %v1102_v1  ;;  %363 = vst.msk [vmem:[#allocation3 + $0x8] sm:$0xff] (!%p937_p10), %vm359_vm0, %v1102_v1 }
  0x19   : > { %s317_s22 = scalar_select %p316_p9, %s1186_s9, 0 }
  0x1a   : > { %358 = sbr.rel (%p937_p10) target bundleno = 33 (0x21), region = 36  ;;  %365 = vst.msk [vmem:[#allocation4] sm:$0xff] (!%p937_p10), %vm364_vm1, %v1102_v1  ;;  %366 = vst.msk [vmem:[#allocation4 + $0x8] sm:$0xff] (!%p937_p10), %vm364_vm1, %v1102_v1 }
  0x1b   : > { %s318_s23 = sadd.s32 %s317_s22, %s1301_s27 }
  0x1c   : > { %s320_s24 = sadd.s32 %s930_s15, %s318_s23 }
  0x1d   : > { %s931_s25 = sshll.u32 %s320_s24, 2 }
  0x1e   : > { %s322_s8 = scalar_lea.vmem %s1281_s4, %s931_s25  ;;  %s335_s28 = scalar_lea.vmem %s1282_s5, %s931_s25 }
  0x21 PF: > { %v1207_v2 = vld [vmem:[%s308_s18] sm:$0xf]  ;;  %v1209_v3 = vld [vmem:[%s308_s18 + $0x4] sm:$0xf]  ;;  %s1216_s27 = sshll.u32 %s1184_s2, 3  ;;  %s939_s1 = sshll.u32 %s1186_s9, 3 }
  0x22   : > { %v1211_v4 = vld [vmem:[%s322_s8] sm:$0xf]  ;;  %s1219_s12 = sadd.s32 7, %s939_s1 }
  0x23   : > { %v1213_v5 = vld [vmem:[%s335_s28] sm:$0xf]  ;;  %p940_p11 = scmp.ge.s32.totalorder %s1216_s27, %s1219_s12 }
  0x24   : > { %vm383_vm2 = vcmask (!%p940_p11), 130048   ;;  %v1103_v6 = vmov (!%p940_p11), 0.0   ;;  %vm1104_vm3 = vmmov (!%p940_p11), 0   ;;  %v941_v8 = vcombine.low (!%p940_p11), %v1207_v2, %v1209_v3  ;;  %v444_v27 = vld [vmem:[#allocation2] sm:$0xff] (!%p940_p11)  ;;  %v445_v30 = vld [vmem:[#allocation2 + $0x8] sm:$0xff] (!%p940_p11)  ;;  %v477_v51 = vld [vmem:[#allocation3] sm:$0xff] (!%p940_p11) }
  0x25   : > { %377 = sbr.rel (%p940_p11) target bundleno = 771 (0x303), region = 40  ;;  %963 = vmatprep.subr.bf16.mxu0 (!%p940_p11), %v1103_v6  ;;  %v388_v7 = vsel (!%p940_p11), %vm383_vm2, %v1211_v4, 0  ;;  %965 = vmatprep.mubr.msk.bf16.mxu0 (!%p940_p11), %vm1104_vm3, %v1103_v6  ;;  %v433_v9 = vlaneseq (!%p940_p11)  ;;  %v435_v12 = vstv (!%p940_p11), %s1216_s27  ;;  %v439_v13 = vstv (!%p940_p11), %s939_s1  ;;  %v478_v54 = vld [vmem:[#allocation3 + $0x8] sm:$0xff] (!%p940_p11)  ;;  %v492_v59 = vld [vmem:[#allocation4] sm:$0xff] (!%p940_p11)  ;;  %v493_v61 = vld [vmem:[#allocation4 + $0x8] sm:$0xff] (!%p940_p11) }
  0x26   : > { %964 = vmatpush3.bf16.xpose.msra.mxu0 (!%p940_p11), %v388_v7  ;;  %969 = vmatprep.subr.bf16.mxu1 (!%p940_p11), %v1103_v6  ;;  %vm446_vm5 = vcmask (!%p940_p11), 64512   ;;  %v1105_v26 = vmov (!%p940_p11), 0   ;;  %vm489_vm6 = vcmask (!%p940_p11), 7168   ;;  %vm510_vm7 = vcmask (!%p940_p11), 1043456  }
  0x27   : > { %971 = vmatprep.mubr.msk.bf16.mxu1 (!%p940_p11), %vm1104_vm3, %v1103_v6  ;;  %v434_v10 = vshrl.u32 (!%p940_p11), %v433_v9, 7  ;;  %v438_v11 = vand.u32 (!%p940_p11), 127, %v433_v9  ;;  %1036 = vset.pattern.permute.xlu1 (!%p940_p11), %v1105_v26  ;;  %v512_v35 = vsel (!%p940_p11), %vm510_vm7, %v1213_v5, 0 }
  0x28   : > { %1037 = vset.pattern.permute.xlu0 (!%p940_p11), %v1105_v26  ;;  %970 = vmatpush3.bf16.msra.mxu1 (!%p940_p11), %v512_v35 }
  0x29   : > { %v436_v14 = vadd.s32 (!%p940_p11), %v435_v12, %v434_v10  ;;  %v440_v15 = vadd.s32 (!%p940_p11), %v439_v13, %v438_v11 }
  0x2b   : > { %vm441_vm4 = vcmp.ge.s32.totalorder (!%p940_p11), %v436_v14, %v440_v15 }
  0x2d   : > { %966 = vmatmul.mubr.msk.bf16.vlgmr.msra.gmra.mrb[0].mxu0 %vm383_vm2, %v941_v8 }
 0x100   : > { %v424_v16 = vpop.f32.mrb[0].mxu0 }
 0x101   : > { %v431_v17 = vmul.f32 0.25, %v424_v16  ;;  %v967_v18 = vpop.f32.mrb[1].mxu0 }
 0x102   : > { %v427_v19 = vpop.f32.mrb[2].mxu0 }
 0x103   : > { %v432_v20 = vmul.f32 0.25, %v427_v19  ;;  %v968_v21 = vpop.f32.mrb[3].mxu0  ;;  %v442_v22 = vsel %vm441_vm4, %v431_v17, -1e+30 }
 0x104   : > { %v447_v23 = vsel %vm446_vm5, %v442_v22, -inf }
 0x105   : > { %448 = vmax.xlane.f32.xlu0 %v447_v23  ;;  %v443_v24 = vsel %vm441_vm4, %v432_v20, -1e+30 }
 0x106   : > { %v450_v25 = vsel %vm446_vm5, %v443_v24, -inf }
 0x109   : > { %451 = vmax.xlane.f32.xlu0 %v450_v25 }
 0x192   : > { %v449_v28 = vpop.xlane.xlu0 %448 }
 0x193   : > { %v453_v29 = vmax.f32 %v444_v27, %v449_v28 }
 0x195   : > { %v455_v31 = vsub.f32 %v444_v27, %v453_v29  ;;  %559 = vst.msk [vmem:[#allocation2] sm:$0xff] %vm489_vm6, %v453_v29  ;;  %463 = vperm.xlu1 %1036, %v453_v29  }
 0x196   : > { %v452_v32 = vpop.xlane.xlu0 %451 }
 0x197   : > { %v454_v33 = vmax.f32 %v445_v30, %v452_v32  ;;  %v457_v48 = vmul.f32 1.442695, %v455_v31 }
 0x199   : > { %v456_v34 = vsub.f32 %v445_v30, %v454_v33  ;;  %560 = vst.msk [vmem:[#allocation2 + $0x8] sm:$0xff] %vm489_vm6, %v454_v33  ;;  %468 = vperm.xlu1 %1036, %v454_v33  }
 0x19b   : > { %v459_v47 = vmul.f32 1.442695, %v456_v34 }
 0x214   : > { %v464_v36 = vpop.permute.xlu1 %463 }
 0x215   : > { %v471_v37 = vsub.f32 %v442_v22, %v464_v36 }
 0x217   : > { %v473_v38 = vmul.f32 1.442695, %v471_v37 }
 0x218   : > { %v469_v39 = vpop.permute.xlu1 %468 }
 0x219   : > { %1038 = vpow2.f32 %v473_v38  ;;  %v472_v40 = vsub.f32 %v443_v24, %v469_v39 }
 0x21b   : > { %v475_v41 = vmul.f32 1.442695, %v472_v40 }
 0x21d   : > { %1040 = vpow2.f32 %v475_v41 }
 0x21e   : > { %1042 = vpow2.f32 %v459_v47 }
 0x21f   : > { %1044 = vpow2.f32 %v457_v48 }
 0x223   : > { %v1039_v42 = vpop.eup %1038 }
 0x224   : > { %v481_v43 = vsel %vm446_vm5, %v1039_v42, 0.0 }
 0x225   : > { %482 = vadd.xlane.f32.xlu0 %v481_v43 }
 0x227   : > { %v1041_v44 = vpop.eup %1040 }
 0x228   : > { %v484_v45 = vsel %vm446_vm5, %v1041_v44, 0.0  ;;  %v506_v46 = vpack.c.bf16 %v1041_v44, %v1039_v42  ;;  %v1043_v49 = vpop.eup %1042 }
 0x229   : > { %485 = vadd.xlane.f32.xlu1 %v484_v45  ;;  %v1045_v50 = vpop.eup %1044  ;;  %v480_v56 = vmul.f32 %v1043_v49, %v478_v54 }
 0x22a   : > { %972 = vmatmul.mubr.msk.bf16.vlgmr.msra.gmra.mrb[0].mxu1 %vm446_vm5, %v506_v46  ;;  %v479_v52 = vmul.f32 %v1045_v50, %v477_v51 }
 0x23a   : > { %501 = vperm.xlu1 %1036, %v1043_v49  }
 0x23b   : > { %496 = vperm.xlu0 %1037, %v1045_v50  }
 0x2b2   : > { %v483_v53 = vpop.xlane.xlu0 %482 }
 0x2b3   : > { %v487_v55 = vadd.f32 %v483_v53, %v479_v52 }
 0x2b5   : > { %490 = vst.msk [vmem:[#allocation3] sm:$0xff] %vm489_vm6, %v487_v55 }
 0x2b6   : > { %v486_v57 = vpop.xlane.xlu1 %485 }
 0x2b7   : > { %v488_v58 = vadd.f32 %v486_v57, %v480_v56 }
 0x2b9   : > { %491 = vst.msk [vmem:[#allocation3 + $0x8] sm:$0xff] %vm489_vm6, %v488_v58 }
 0x2ba   : > { %v497_v60 = vpop.permute.xlu0 %496  ;;  %v502_v62 = vpop.permute.xlu1 %501 }
 0x2bb   : > { %v504_v63 = vmul.f32 %v497_v60, %v492_v59  ;;  %v505_v1 = vmul.f32 %v502_v62, %v493_v61 }
 0x2fd   : > { %v548_v0 = vpop.f32.mrb[0].mxu1 }
 0x2fe   : > { %v555_v6 = vadd.f32 %v548_v0, %v504_v63  ;;  %v973_v7 = vpop.f32.mrb[1].mxu1 }
 0x2ff   : > { %v551_v8 = vpop.f32.mrb[2].mxu1 }
 0x300   : > { %557 = vst.msk [vmem:[#allocation4] sm:$0xff] %vm383_vm2, %v555_v6  ;;  %v556_v9 = vadd.f32 %v551_v8, %v505_v1  ;;  %v974_v10 = vpop.f32.mrb[3].mxu1 }
 0x302   : > { %558 = vst.msk [vmem:[#allocation4 + $0x8] sm:$0xff] %vm383_vm2, %v556_v9 }
 0x303 PF: > { %p944_p12 = scmp.lt.s32.totalorder %s1216_s27, %s1219_s12 }
 0x304   : > { %vm570_vm8 = vcmask (!%p944_p12), 130048   ;;  %v1106_v11 = vmov (!%p944_p12), 0.0   ;;  %vm1107_vm9 = vmmov (!%p944_p12), 0   ;;  %v945_v13 = vcombine.low (!%p944_p12), %v1207_v2, %v1209_v3  ;;  %v620_v22 = vld [vmem:[#allocation2] sm:$0xff] (!%p944_p12)  ;;  %v621_v23 = vld [vmem:[#allocation2 + $0x8] sm:$0xff] (!%p944_p12)  ;;  %v653_v43 = vld [vmem:[#allocation3] sm:$0xff] (!%p944_p12) }
 0x305   : > { %564 = sbr.rel (%p944_p12) target bundleno = 1506 (0x5e2), region = 44  ;;  %975 = vmatprep.subr.bf16.mxu0 (!%p944_p12), %v1106_v11  ;;  %v575_v12 = vsel (!%p944_p12), %vm570_vm8, %v1211_v4, 0  ;;  %977 = vmatprep.mubr.msk.bf16.mxu0 (!%p944_p12), %vm1107_vm9, %v1106_v11  ;;  %vm622_vm10 = vcmask (!%p944_p12), 64512   ;;  %v1108_v21 = vmov (!%p944_p12), 0   ;;  %vm665_vm11 = vcmask (!%p944_p12), 7168   ;;  %v654_v46 = vld [vmem:[#allocation3 + $0x8] sm:$0xff] (!%p944_p12) }
 0x306   : > { %976 = vmatpush3.bf16.xpose.msra.mxu0 (!%p944_p12), %v575_v12  ;;  %981 = vmatprep.subr.bf16.mxu1 (!%p944_p12), %v1106_v11  ;;  %vm686_vm12 = vcmask (!%p944_p12), 1043456  }
 0x307   : > { %983 = vmatprep.mubr.msk.bf16.mxu1 (!%p944_p12), %vm1107_vm9, %v1106_v11  ;;  %1046 = vset.pattern.permute.xlu1 (!%p944_p12), %v1108_v21  ;;  %v688_v28 = vsel (!%p944_p12), %vm686_vm12, %v1213_v5, 0  ;;  %v668_v51 = vld [vmem:[#allocation4] sm:$0xff] (!%p944_p12) }
 0x308   : > { %1047 = vset.pattern.permute.xlu0 (!%p944_p12), %v1108_v21  ;;  %982 = vmatpush3.bf16.msra.mxu1 (!%p944_p12), %v688_v28 }
 0x309   : > { %v669_v53 = vld [vmem:[#allocation4 + $0x8] sm:$0xff] (!%p944_p12) }
 0x30d   : > { %978 = vmatmul.mubr.msk.bf16.vlgmr.msra.gmra.mrb[0].mxu0 %vm570_vm8, %v945_v13 }
 0x3e0   : > { %v611_v14 = vpop.f32.mrb[0].mxu0 }
 0x3e1   : > { %v618_v15 = vmul.f32 0.25, %v611_v14  ;;  %v979_v16 = vpop.f32.mrb[1].mxu0 }
 0x3e2   : > { %v614_v17 = vpop.f32.mrb[2].mxu0 }
 0x3e3   : > { %v619_v18 = vmul.f32 0.25, %v614_v17  ;;  %v980_v19 = vpop.f32.mrb[3].mxu0  ;;  %v623_v20 = vsel %vm622_vm10, %v618_v15, -inf }
 0x3e4   : > { %624 = vmax.xlane.f32.xlu0 %v623_v20 }
 0x3e5   : > { %v626_v4 = vsel %vm622_vm10, %v619_v18, -inf }
 0x3e8   : > { %627 = vmax.xlane.f32.xlu0 %v626_v4 }
 0x471   : > { %v625_v2 = vpop.xlane.xlu0 %624 }
 0x472   : > { %v629_v3 = vmax.f32 %v620_v22, %v625_v2 }
 0x474   : > { %v631_v24 = vsub.f32 %v620_v22, %v629_v3  ;;  %735 = vst.msk [vmem:[#allocation2] sm:$0xff] %vm665_vm11, %v629_v3  ;;  %639 = vperm.xlu1 %1046, %v629_v3  }
 0x475   : > { %v628_v25 = vpop.xlane.xlu0 %627 }
 0x476   : > { %v630_v26 = vmax.f32 %v621_v23, %v628_v25  ;;  %v633_v40 = vmul.f32 1.442695, %v631_v24 }
 0x478   : > { %v632_v27 = vsub.f32 %v621_v23, %v630_v26  ;;  %736 = vst.msk [vmem:[#allocation2 + $0x8] sm:$0xff] %vm665_vm11, %v630_v26  ;;  %644 = vperm.xlu1 %1046, %v630_v26  }
 0x47a   : > { %v635_v5 = vmul.f32 1.442695, %v632_v27 }
 0x4f3   : > { %v640_v29 = vpop.permute.xlu1 %639 }
 0x4f4   : > { %v647_v30 = vsub.f32 %v618_v15, %v640_v29 }
 0x4f6   : > { %v649_v31 = vmul.f32 1.442695, %v647_v30 }
 0x4f7   : > { %v645_v32 = vpop.permute.xlu1 %644 }
 0x4f8   : > { %1048 = vpow2.f32 %v649_v31  ;;  %v648_v33 = vsub.f32 %v619_v18, %v645_v32 }
 0x4fa   : > { %v651_v34 = vmul.f32 1.442695, %v648_v33 }
 0x4fc   : > { %1050 = vpow2.f32 %v651_v34 }
 0x4fd   : > { %1052 = vpow2.f32 %v635_v5 }
 0x4fe   : > { %1054 = vpow2.f32 %v633_v40 }
 0x502   : > { %v1049_v35 = vpop.eup %1048 }
 0x503   : > { %v657_v36 = vsel %vm622_vm10, %v1049_v35, 0.0 }
 0x504   : > { %658 = vadd.xlane.f32.xlu0 %v657_v36 }
 0x506   : > { %v1051_v37 = vpop.eup %1050 }
 0x507   : > { %v660_v38 = vsel %vm622_vm10, %v1051_v37, 0.0  ;;  %v682_v39 = vpack.c.bf16 %v1051_v37, %v1049_v35  ;;  %v1053_v41 = vpop.eup %1052 }
 0x508   : > { %661 = vadd.xlane.f32.xlu1 %v660_v38  ;;  %v1055_v42 = vpop.eup %1054  ;;  %v656_v48 = vmul.f32 %v1053_v41, %v654_v46 }
 0x509   : > { %984 = vmatmul.mubr.msk.bf16.vlgmr.msra.gmra.mrb[0].mxu1 %vm622_vm10, %v682_v39  ;;  %v655_v44 = vmul.f32 %v1055_v42, %v653_v43 }
 0x519   : > { %677 = vperm.xlu1 %1046, %v1053_v41  }
 0x51a   : > { %672 = vperm.xlu0 %1047, %v1055_v42  }
 0x591   : > { %v659_v45 = vpop.xlane.xlu0 %658 }
 0x592   : > { %v663_v47 = vadd.f32 %v659_v45, %v655_v44 }
 0x594   : > { %666 = vst.msk [vmem:[#allocation3] sm:$0xff] %vm665_vm11, %v663_v47 }
 0x595   : > { %v662_v49 = vpop.xlane.xlu1 %661 }
 0x596   : > { %v664_v50 = vadd.f32 %v662_v49, %v656_v48 }
 0x598   : > { %667 = vst.msk [vmem:[#allocation3 + $0x8] sm:$0xff] %vm665_vm11, %v664_v50 }
 0x599   : > { %v673_v52 = vpop.permute.xlu0 %672  ;;  %v678_v54 = vpop.permute.xlu1 %677 }
 0x59a   : > { %v680_v55 = vmul.f32 %v673_v52, %v668_v51  ;;  %v681_v57 = vmul.f32 %v678_v54, %v669_v53 }
 0x5dc   : > { %v724_v56 = vpop.f32.mrb[0].mxu1 }
 0x5dd   : > { %v731_v58 = vadd.f32 %v724_v56, %v680_v55  ;;  %v985_v59 = vpop.f32.mrb[1].mxu1 }
 0x5de   : > { %v727_v60 = vpop.f32.mrb[2].mxu1 }
 0x5df   : > { %733 = vst.msk [vmem:[#allocation4] sm:$0xff] %vm570_vm8, %v731_v58  ;;  %v732_v61 = vadd.f32 %v727_v60, %v681_v57  ;;  %v986_v62 = vpop.f32.mrb[3].mxu1 }
 0x5e1   : > { %734 = vst.msk [vmem:[#allocation4 + $0x8] sm:$0xff] %vm570_vm8, %v732_v61 }
 0x5e2 PF: > { %s737_s2 = sld [smem:[#allocation8]] }
 0x5e8   : > { %p948_p13 = scmp.ne.s32.totalorder %s737_s2, 1 }
 0x5e9   : > { %v744_v63 = vld [vmem:[#allocation3] sm:$0xff] (!%p948_p13)  ;;  %v745_v0 = vld [vmem:[#allocation3 + $0x8] sm:$0xff] (!%p948_p13)  ;;  %v1109_v1 = vmov (!%p948_p13), 0   ;;  %v742_v8 = vld [vmem:[#allocation4] sm:$0xff] (!%p948_p13)  ;;  %vm768_vm13 = vcmask (!%p948_p13), 125952  }
 0x5ea   : > { %741 = sbr.rel (%p948_p13) target bundleno = 1662 (0x67e), region = 48  ;;  %1056 = vset.pattern.permute.xlu0 (!%p948_p13), %v1109_v1  ;;  %1057 = vrcp.f32 (!%p948_p13), %v744_v63  ;;  %v743_v11 = vld [vmem:[#allocation4 + $0x8] sm:$0xff] (!%p948_p13) }
 0x5eb   : > { %1059 = vrcp.f32 (!%p948_p13), %v745_v0 }
 0x5f4   : > { %v1058_v6 = vpop.eup %1057 }
 0x5f5   : > { %750 = vperm.xlu0 %1056, %v1058_v6   ;;  %v1060_v7 = vpop.eup %1059 }
 0x5f9   : > { %755 = vperm.xlu0 %1056, %v1060_v7  }
 0x674   : > { %v751_v9 = vpop.permute.xlu0 %750 }
 0x675   : > { %v758_v10 = vmul.f32 %v751_v9, %v742_v8 }
 0x677   : > { %v953_v12 = vpack.c.bf16 %v758_v10, %v758_v10 }
 0x678   : > { %v756_v13 = vpop.permute.xlu0 %755 }
 0x679   : > { %769 = vst.msk [vmem:[%s1197_s21] sm:$0xf] %vm768_vm13, %v953_v12  ;;  %v759_v14 = vmul.f32 %v756_v13, %v743_v11 }
 0x67b   : > { %v954_v15 = vpack.c.bf16 %v759_v14, %v759_v14 }
 0x67d   : > { %770 = vst.msk [vmem:[%s1197_s21 + $0x4] sm:$0xf] %vm768_vm13, %v954_v15 }
 0x67e PF: > { %s19_s7 = sadd.s32 1, %s1099_s7   ;;  %s1285_s9 = sld [smem:[#allocation9_spill]] }
 0x67f   : > { %p16_p0 = scmp.ge.s32.totalorder %s19_s7, 6   ;;  %s1286_s27 = smov %s1091_s29 }
 0x680   : > { %s1287_s28 = smov %s1095_s30  ;;  %s1288_s29 = smov %s1291_s0 }
 0x681   :  { %18 = sbr.rel (!%p16_p0) target bundleno = 4 (0x4), region = 84 }
 0x684   : > { %s1289_s30 = smov %s1285_s9 }

// kernel: transformer_forward.12
= control target key start
LH: loop header
LB: loop body
LE: loop exit
PB: predicated region body
PF: predicated region fallthrough
CT: control target
= control target key end

     0   :  { %vm31_vm0 = vcmask 523264   ;;  %v476_v8 = vmov 0.0   ;;  %vm477_vm1 = vmmov 0   ;;  %v52_v18 = vlaneseq  ;;  %s601_s0 = inlined_call_operand.vmem [shape: bf16[16,64], index: 0, kind: input, shape index: {}]   ;;  %s602_s2 = inlined_call_operand.vmem [shape: bf16[64,128], index: 2, kind: input, shape index: {}]   ;;  %s603_s3 = inlined_call_operand.vmem [shape: bf16[64,128], index: 3, kind: input, shape index: {}]   ;;  %s604_s1 = inlined_call_operand.vmem [shape: bf16[1,64], index: 1, kind: input, shape index: {}]   ;;  %s605_s4 = inlined_call_operand.vmem [shape: bf16[128,64], index: 4, kind: input, shape index: {}]   ;;  %s606_s5 = inlined_call_operand.vmem [shape: bf16[16,64], index: 5, kind: output, shape index: {}]  }
   0x1   :  { %v380_v0 = vld [vmem:[%s601_s0] sm:$0xff]   ;;  %402 = vmatprep.subr.bf16.mxu1 %v476_v8  ;;  %58 = vst.msk [vmem:[#allocation3] sm:$0xff] %vm31_vm0, %v476_v8  ;;  %59 = vst.msk [vmem:[#allocation3 + $0x8] sm:$0xff] %vm31_vm0, %v476_v8  ;;  %426 = vmatprep.subr.bf16.mxu0 %v476_v8  ;;  %v449_v9 = vld [vmem:[%s602_s2 + $0x8] sm:$0xff]   ;;  %vm350_vm2 = vcmask 519168  }
   0x2   :  { %v381_v1 = vunpack.c.l.bf16 %v380_v0  ;;  %v382_v2 = vunpack.c.h.bf16 %v380_v0  ;;  %v448_v7 = vld [vmem:[%s602_s2] sm:$0xff]   ;;  %v450_v10 = vld [vmem:[%s602_s2 + $0x10] sm:$0xff]   ;;  %v451_v11 = vld [vmem:[%s602_s2 + $0x18] sm:$0xff]   ;;  %410 = vmatprep.mubr.msk.bf16.mxu1 %vm477_vm1, %v476_v8  ;;  %442 = vmatprep.mubr.msk.bf16.mxu0 %vm477_vm1, %v476_v8  ;;  %v53_v19 = vshrl.u32 %v52_v18, 7 }
   0x3   :  { %403 = vmatpush3.bf16.msra.mxu1 %v448_v7  ;;  %v48_v20 = vld [vmem:[%s604_s1] sm:$0x1]  ;;  %v453_v32 = vld [vmem:[%s603_s3 + $0x8] sm:$0xff]   ;;  %v454_v33 = vld [vmem:[%s603_s3 + $0x10] sm:$0xff]  }
   0x4   :  { %v29_v3 = vmul.f32 %v381_v1, %v381_v1  ;;  %v30_v4 = vmul.f32 %v382_v2, %v382_v2  ;;  %404 = vmatprep.subr.bf16.mxu1 %v476_v8  ;;  %v50_v21 = vpack.i.b16 %v48_v20, %v48_v20  ;;  %v54_v22 = vsub.s32 0, %v53_v19  ;;  %v452_v30 = vld [vmem:[%s603_s3] sm:$0xff]   ;;  %v455_v34 = vld [vmem:[%s603_s3 + $0x18] sm:$0xff]   ;;  %v457_v36 = vld [vmem:[%s605_s4 + $0x8] sm:$0xff]  }
   0x5   :  { %v456_v35 = vld [vmem:[%s605_s4] sm:$0xff]   ;;  %v458_v37 = vld [vmem:[%s605_s4 + $0x10] sm:$0xff]   ;;  %v459_v38 = vld [vmem:[%s605_s4 + $0x18] sm:$0xff]  }
   0x6   :  { %v32_v5 = vsel %vm31_vm0, %v29_v3, 0.0  ;;  %v35_v6 = vsel %vm31_vm0, %v30_v4, 0.0  ;;  %v55_v26 = vrot.slane %v50_v21, %v54_v22  ;;  %427 = vmatpush3.bf16.msra.mxu0 %v456_v35  ;;  %v460_v39 = vld [vmem:[%s605_s4 + $0x20] sm:$0xff]   ;;  %v461_v40 = vld [vmem:[%s605_s4 + $0x28] sm:$0xff]   ;;  %v462_v41 = vld [vmem:[%s605_s4 + $0x30] sm:$0xff]  }
   0x7   :  { %33 = vadd.xlane.f32.xlu0 %v32_v5  ;;  %405 = vmatpush3.bf16.msra.mxu1 %v449_v9  ;;  %v463_v42 = vld [vmem:[%s605_s4 + $0x38] sm:$0xff]  }
   0x8   :  { %406 = vmatprep.subr.bf16.mxu1 %v476_v8  ;;  %428 = vmatprep.subr.bf16.mxu0 %v476_v8  ;;  %v226_v4 = vld [vmem:[#allocation3 + $0x8] sm:$0xff] }
   0xa   :  { %429 = vmatpush3.bf16.msra.mxu0 %v457_v36 }
   0xb   :  { %36 = vadd.xlane.f32.xlu0 %v35_v6  ;;  %407 = vmatpush3.bf16.msra.mxu1 %v450_v10 }
   0xc   :  { %408 = vmatprep.subr.bf16.mxu1 %v476_v8  ;;  %430 = vmatprep.subr.bf16.mxu0 %v476_v8 }
   0xe   :  { %431 = vmatpush3.bf16.msra.mxu0 %v458_v37 }
   0xf   :  { %409 = vmatpush3.bf16.msra.mxu1 %v451_v11  ;;  %432 = vmatprep.subr.bf16.mxu0 %v476_v8 }
  0x10   :  { %414 = vmatprep.subr.bf16.mxu1 %v476_v8 }
  0x12   :  { %433 = vmatpush3.bf16.msra.mxu0 %v459_v38 }
  0x13   :  { %434 = vmatprep.subr.bf16.mxu0 %v476_v8 }
  0x16   :  { %435 = vmatpush3.bf16.msra.mxu0 %v460_v39 }
  0x17   :  { %436 = vmatprep.subr.bf16.mxu0 %v476_v8 }
  0x1a   :  { %437 = vmatpush3.bf16.msra.mxu0 %v461_v40 }
  0x1b   :  { %438 = vmatprep.subr.bf16.mxu0 %v476_v8 }
  0x1e   :  { %439 = vmatpush3.bf16.msra.mxu0 %v462_v41 }
  0x1f   :  { %440 = vmatprep.subr.bf16.mxu0 %v476_v8 }
  0x22   :  { %441 = vmatpush3.bf16.msra.mxu0 %v463_v42 }
  0x94   :  { %v34_v12 = vpop.xlane.xlu0 %33 }
  0x95   :  { %v39_v13 = vmul.f32 0.015625, %v34_v12 }
  0x97   :  { %v41_v14 = vadd.f32 1e-05, %v39_v13 }
  0x98   :  { %v37_v15 = vpop.xlane.xlu0 %36 }
  0x99   :  { %v40_v16 = vmul.f32 0.015625, %v37_v15  ;;  %464 = vrsqrt.f32 %v41_v14 }
  0x9b   :  { %v42_v17 = vadd.f32 1e-05, %v40_v16 }
  0x9d   :  { %466 = vrsqrt.f32 %v42_v17 }
  0xa3   :  { %v465_v23 = vpop.eup %464 }
  0xa4   :  { %v45_v25 = vmul.f32 %v465_v23, %v381_v1 }
  0xa7   :  { %v467_v24 = vpop.eup %466 }
  0xa8   :  { %v46_v27 = vmul.f32 %v467_v24, %v382_v2  ;;  %v225_v2 = vld [vmem:[#allocation3] sm:$0xff] }
  0xaa   :  { %v47_v28 = vpack.c.bf16 %v46_v27, %v45_v25 }
  0xac   :  { %v56_v29 = vmul.bf16 %v55_v26, %v47_v28 }
  0xae   :  { %57 = vst.msk [vmem:[#allocation2] sm:$0xff] %vm31_vm0, %v56_v29 }
  0xb5   :  { %v60_v31 = vld [vmem:[#allocation2] sm:$0xff] }
  0xb6   :  { %411 = vmatmul.mubr.msk.bf16.vlgmr.msra.gmra.mrb[0].mxu1 %vm31_vm0, %v60_v31 }
  0xb7   :  { %415 = vmatpush3.bf16.msra.mxu1 %v452_v30  ;;  %422 = vmatprep.mubr.msk.bf16.mxu1 %vm477_vm1, %v476_v8 }
  0xb8   :  { %416 = vmatprep.subr.bf16.mxu1 %v476_v8 }
  0xbb   :  { %417 = vmatpush3.bf16.msra.mxu1 %v453_v32 }
  0xbc   :  { %418 = vmatprep.subr.bf16.mxu1 %v476_v8 }
  0xbf   :  { %419 = vmatpush3.bf16.msra.mxu1 %v454_v33 }
  0xc0   :  { %420 = vmatprep.subr.bf16.mxu1 %v476_v8 }
  0xc3   :  { %421 = vmatpush3.bf16.msra.mxu1 %v455_v34 }
  0xc6   :  { %423 = vmatmul.mubr.msk.bf16.vlgmr.msra.gmra.mrb[4].mxu1 %vm31_vm0, %v60_v31 }
 0x189   :  { %v131_v43 = vpop.f32.mrb[0].mxu1 }
 0x18a   :  { %v211_v44 = vsub.f32 0.0, %v131_v43  ;;  %v412_v45 = vpop.f32.mrb[1].mxu1 }
 0x18b   :  { %v134_v46 = vpop.f32.mrb[2].mxu1 }
 0x18c   :  { %v213_v47 = vmul.f32 1.442695, %v211_v44  ;;  %v212_v48 = vsub.f32 0.0, %v134_v46  ;;  %v413_v49 = vpop.f32.mrb[3].mxu1 }
 0x18e   :  { %468 = vpow2.f32 %v213_v47  ;;  %v215_v50 = vmul.f32 1.442695, %v212_v48 }
 0x190   :  { %470 = vpow2.f32 %v215_v50 }
 0x198   :  { %v469_v51 = vpop.eup %468 }
 0x199   :  { %v217_v52 = vadd.f32 1.0, %v469_v51  ;;  %v204_v53 = vpop.f32.mrb[4].mxu1 }
 0x19a   :  { %v471_v54 = vpop.eup %470  ;;  %v424_v55 = vpop.f32.mrb[5].mxu1 }
 0x19b   :  { %472 = vrcp.f32 %v217_v52  ;;  %v218_v56 = vadd.f32 1.0, %v471_v54  ;;  %v207_v57 = vpop.f32.mrb[6].mxu1 }
 0x19c   :  { %v425_v58 = vpop.f32.mrb[7].mxu1 }
 0x19d   :  { %474 = vrcp.f32 %v218_v56 }
 0x1a5   :  { %v473_v59 = vpop.eup %472 }
 0x1a6   :  { %v220_v60 = vmul.f32 %v473_v59, %v131_v43 }
 0x1a7   :  { %v475_v61 = vpop.eup %474 }
 0x1a8   :  { %v222_v62 = vmul.f32 %v475_v61, %v134_v46  ;;  %v223_v63 = vmul.f32 %v220_v60, %v204_v53 }
 0x1aa   :  { %v224_v0 = vmul.f32 %v222_v62, %v207_v57 }
 0x1ac   :  { %v227_v1 = vpack.c.bf16 %v224_v0, %v223_v63 }
 0x1ae   :  { %443 = vmatmul.mubr.bf16.vlgmr.msra.gmra.mrb[0].mxu0 %v227_v1 }
 0x281   :  { %v326_v3 = vpop.f32.mrb[0].mxu0 }
 0x282   :  { %v333_v5 = vadd.f32 %v326_v3, %v225_v2  ;;  %v444_v6 = vpop.f32.mrb[1].mxu0 }
 0x283   :  { %v329_v7 = vpop.f32.mrb[2].mxu0 }
 0x284   :  { %335 = vst.msk [vmem:[#allocation3] sm:$0xff] %vm31_vm0, %v333_v5  ;;  %v334_v8 = vadd.f32 %v329_v7, %v226_v4  ;;  %v445_v9 = vpop.f32.mrb[3].mxu0 }
 0x286   :  { %336 = vst.msk [vmem:[#allocation3 + $0x8] sm:$0xff] %vm31_vm0, %v334_v8 }
 0x28b   :  { %v340_v10 = vld [vmem:[#allocation3] sm:$0xff] }
 0x28c   :  { %v377_v11 = vpack.c.bf16 %v340_v10, %v340_v10 }
 0x28d   :  { %v341_v12 = vld [vmem:[#allocation3 + $0x8] sm:$0xff] }
 0x28e   :  { %351 = vst.msk [vmem:[%s606_s5] sm:$0xf] %vm350_vm2, %v377_v11  ;;  %v378_v13 = vpack.c.bf16 %v341_v12, %v341_v12 }
 0x290   :  { %352 = vst.msk [vmem:[%s606_s5 + $0x4] sm:$0xf] %vm350_vm2, %v378_v13 }

// kernel: transformer_forward.17
= control target key start
LH: loop header
LB: loop body
LE: loop exit
PB: predicated region body
PF: predicated region fallthrough
CT: control target
= control target key end

     0   :  { %vm26_vm0 = vcmask 523264   ;;  %s272_s0 = inlined_call_operand.vmem [shape: bf16[16,64], index: 0, kind: input, shape index: {}]   ;;  %s273_s1 = inlined_call_operand.vmem [shape: bf16[1,64], index: 1, kind: input, shape index: {}]   ;;  %s274_s2 = inlined_call_operand.vmem [shape: bf16[64,96], index: 2, kind: input, shape index: {}]   ;;  %s275_s3 = inlined_call_operand.hbm [shape: f32[16,96], index: 3, kind: output, shape index: {}]  }
   0x1   :  { %v156_v0 = vld [vmem:[%s272_s0] sm:$0xff]  }
   0x2   :  { %v157_v1 = vunpack.c.l.bf16 %v156_v0  ;;  %v158_v2 = vunpack.c.h.bf16 %v156_v0 }
   0x4   :  { %v24_v3 = vmul.f32 %v157_v1, %v157_v1  ;;  %v25_v4 = vmul.f32 %v158_v2, %v158_v2 }
   0x5   :  { %8 = vsyncpa [#allocation4], 0  ;;  %v181_v7 = vld [vmem:[%s274_s2] sm:$0xff]   ;;  %v213_v8 = vmov 0.0   ;;  %v182_v9 = vld [vmem:[%s274_s2 + $0x8] sm:$0xff]   ;;  %vm214_vm1 = vmmov 0   ;;  %v47_v18 = vlaneseq }
   0x6   :  { %v27_v5 = vsel %vm26_vm0, %v24_v3, 0.0  ;;  %v30_v6 = vsel %vm26_vm0, %v25_v4, 0.0  ;;  %164 = vmatprep.subr.bf16.mxu0 %v213_v8  ;;  %v183_v10 = vld [vmem:[%s274_s2 + $0x10] sm:$0xff]   ;;  %v184_v11 = vld [vmem:[%s274_s2 + $0x18] sm:$0xff]   ;;  %172 = vmatprep.mubr.msk.bf16.mxu0 %vm214_vm1, %v213_v8  ;;  %v43_v20 = vld [vmem:[%s273_s1] sm:$0x1] }
   0x7   :  { %28 = vadd.xlane.f32.xlu0 %v27_v5  ;;  %165 = vmatpush3.bf16.msra.mxu0 %v181_v7  ;;  %v48_v19 = vshrl.u32 %v47_v18, 7  ;;  %v45_v21 = vpack.i.b16 %v43_v20, %v43_v20  ;;  %s215_s2 = smov [#allocation3]   ;;  %vm131_vm2 = vcmask 785408  }
   0x8   :  { %166 = vmatprep.subr.bf16.mxu0 %v213_v8  ;;  %s139_s23 = sshll.u32 %s215_s2, 4  ;;  %s140_s23 = int_to_ptr.vmem [resolvable:$true] %s139_s23 }
   0x9   :  { %v49_v22 = vsub.s32 0, %v48_v19  ;;  %s189_s1 = scalar_lea.vmem %s140_s23, 256  ;;  %p194_p1 = scmp.lt.s32.totalorder %s140_s23, %s140_s23 }
   0xa   :  { %p190_p0 = scmp.ne.s32.totalorder %s140_s23, %s189_s1  ;;  %p195_p2 = scmp.lt.s32.totalorder %s189_s1, %s189_s1 }
   0xb   :  { %31 = vadd.xlane.f32.xlu0 %v30_v6  ;;  %167 = vmatpush3.bf16.msra.mxu0 %v182_v9  ;;  %v50_v26 = vrot.slane %v45_v21, %v49_v22 }
   0xc   :  { %168 = vmatprep.subr.bf16.mxu0 %v213_v8  ;;  %p196_p3 = por %p195_p2, %p194_p1 }
   0xe   :  { %p197_p4 = pnand %p196_p3, %p190_p0 }
   0xf   :  { %169 = vmatpush3.bf16.msra.mxu0 %v183_v10 }
  0x10   :  { %170 = vmatprep.subr.bf16.mxu0 %v213_v8 }
  0x13   :  { %171 = vmatpush3.bf16.msra.mxu0 %v184_v11 }
  0x94   :  { %v29_v12 = vpop.xlane.xlu0 %28 }
  0x95   :  { %v34_v13 = vmul.f32 0.015625, %v29_v12 }
  0x97   :  { %v36_v14 = vadd.f32 1e-05, %v34_v13 }
  0x98   :  { %v32_v15 = vpop.xlane.xlu0 %31 }
  0x99   :  { %v35_v16 = vmul.f32 0.015625, %v32_v15  ;;  %185 = vrsqrt.f32 %v36_v14 }
  0x9b   :  { %v37_v17 = vadd.f32 1e-05, %v35_v16 }
  0x9d   :  { %187 = vrsqrt.f32 %v37_v17 }
  0xa3   :  { %v186_v23 = vpop.eup %185 }
  0xa4   :  { %v40_v25 = vmul.f32 %v186_v23, %v157_v1 }
  0xa7   :  { %v188_v24 = vpop.eup %187 }
  0xa8   :  { %v41_v27 = vmul.f32 %v188_v24, %v158_v2 }
  0xaa   :  { %v42_v28 = vpack.c.bf16 %v41_v27, %v40_v25 }
  0xac   :  { %v51_v29 = vmul.bf16 %v50_v26, %v42_v28 }
  0xae   :  { %52 = vst.msk [vmem:[#allocation2] sm:$0xff] %vm26_vm0, %v51_v29 }
  0xb5   :  { %v53_v30 = vld [vmem:[#allocation2] sm:$0xff] }
  0xb6   :  { %173 = vmatmul.mubr.msk.bf16.vlgmr.msra.gmra.mrb[0].mxu0 %vm26_vm0, %v53_v30 }
 0x189   :  { %v124_v31 = vpop.f32.mrb[0].mxu0 }
 0x18a   :  { %132 = vst.msk [vmem:[#allocation3] sm:$0xff] %vm131_vm2, %v124_v31  ;;  %v174_v32 = vpop.f32.mrb[1].mxu0 }
 0x18b   :  { %v127_v33 = vpop.f32.mrb[2].mxu0 }
 0x18c   :  { %133 = vst.msk [vmem:[#allocation3 + $0x8] sm:$0xff] %vm131_vm2, %v127_v33  ;;  %v175_v34 = vpop.f32.mrb[3].mxu0 }
 0x18d   :  { %200 = shalt.err (!%p197_p4)
}
 0x18e   :  { %s201_s26 = scalar_lea.hbm %s275_s3, 256 }
 0x18f   :  { %p202_p5 = scmp.ne.s32.totalorder %s275_s3, %s201_s26  ;;  %p205_p6 = scmp.lt.u32.totalorder %s201_s26, %s275_s3 }
 0x191   :  { %p207_p7 = pnand %p205_p6, %p202_p5 }
 0x193   :  { %210 = shalt.err (!%p207_p7)
}
 0x194   :  { %s216_s4 = smov 128   ;;  %s217_s5 = smov 8  }
 0x195   :  { %145 = dma.vmem_to_hbm [thread:$0]  %s140_s23, 256, %s275_s3, [#allocation4], %s216_s4, %s216_s4, %s217_s5  }
 0x196   :  { %211 = dma.done.wait [#allocation4], 256  }
 0x197   :  { %212 = vsyncadd [#allocation4], 4294967040 }
 0x198   :  { %149 = vsyncpa [#allocation4], 1 }

</bundles_post_ra>
